<compile_context>
chip_gen: v6e
topology: v6e:2x2x1
jax: 0.10.0
libtpu: 0.0.40
codegen_flags: <defaults>
</compile_context>

<pallas_src>
import functools
import math

import jax
import jax.numpy as jnp
from jax.experimental import pallas as pl
from jax.experimental.pallas import tpu as pltpu


# ----------------------------------------------------------------------------
# Kernel
# ----------------------------------------------------------------------------

def _layer_norm(x, g, b, eps=1e-12):
    mean = jnp.mean(x, axis=-1, keepdims=True)
    var = jnp.mean((x - mean) ** 2, axis=-1, keepdims=True)
    return (x - mean) * jax.lax.rsqrt(var + eps) * g + b


def _bert_layer_kernel(
    # per-batch-row inputs (resident across the layer axis)
    emb_ref, bias_ref, pool_ref,
    # embedding layernorm (constant)
    emb_g_ref, emb_b_ref,
    # current layer's weights (streamed per grid step on the layer axis)
    wq_ref, wk_ref, wv_ref, bq_ref, bk_ref, bv_ref,
    wo_ref, bo_ref, ln1_g_ref, ln1_b_ref,
    wff1_ref, bff1_ref, wff2_ref, bff2_ref, ln2_g_ref, ln2_b_ref,
    # classifier head (constant)
    w1t_ref, w1p_ref, b1_ref, w2_ref, b2_ref,
    # output
    o_ref,
    # scratch: resident activations for this batch row
    h_ref,
    *, num_heads, seq_len, hidden, scale):
    bf16 = jnp.bfloat16
    f32 = jnp.float32
    layer = pl.program_id(1)

    # --- first layer step for this batch row: embedding layer norm ---
    @pl.when(layer == 0)
    def _():
        h_ref[...] = _layer_norm(emb_ref[...], emb_g_ref[...], emb_b_ref[...])

    h = h_ref[...]                                               # (L, H) f32

    # --- self-attention, all heads batched (head = leading batch dim) ---
    x_b = jnp.broadcast_to(h.astype(bf16)[None],
                           (num_heads, seq_len, hidden))         # (nH, L, H)
    q = jnp.einsum('hld,hdk->hlk', x_b, wq_ref[...],
                   preferred_element_type=f32) + bq_ref[...]     # (nH, L, dh)
    k = jnp.einsum('hld,hdk->hlk', x_b, wk_ref[...],
                   preferred_element_type=f32) + bk_ref[...]
    v = jnp.einsum('hld,hdk->hlk', x_b, wv_ref[...],
                   preferred_element_type=f32) + bv_ref[...]
    s = jnp.einsum('hqd,hkd->hqk', q.astype(bf16), k.astype(bf16),
                   preferred_element_type=f32) * scale           # (nH, L, L)
    s = s + bias_ref[...][None]          # mask bias: broadcast ONCE per layer
    s = s - jnp.max(s, axis=-1, keepdims=True)
    p = jnp.exp(s)
    # NOTE: approx reciprocal (EUP slot) for the softmax denominator; tiny
    # deviation vs. the exact-division PyTorch softmax (fine for inference).
    p = p * pl.reciprocal(jnp.sum(p, axis=-1, keepdims=True), approx=True)
    ctx = jnp.einsum('hqk,hkd->hqd', p.astype(bf16), v.astype(bf16),
                     preferred_element_type=f32)                 # (nH, L, dh)
    # concat(heads) @ Wo  ==  sum_h ctx_h @ Wo_h   (no lane concat / relayout)
    attn = jnp.sum(jnp.einsum('hqd,hdo->hqo', ctx.astype(bf16), wo_ref[...],
                              preferred_element_type=f32),
                   axis=0) + bo_ref[...]                         # (L, H)
    h = _layer_norm(h + attn, ln1_g_ref[...], ln1_b_ref[...])

    # --- feed-forward ---
    ff = jnp.dot(h.astype(bf16), wff1_ref[...],
                 preferred_element_type=f32) + bff1_ref[...]
    # TODO(synk): HF BERT uses exact erf GELU; tanh-approx GELU used in-kernel.
    ff = jax.nn.gelu(ff)
    ff = jnp.dot(ff.astype(bf16), wff2_ref[...],
                 preferred_element_type=f32) + bff2_ref[...]
    h = _layer_norm(h + ff, ln2_g_ref[...], ln2_b_ref[...])
    h_ref[...] = h

    # --- after the last layer: fused masked-mean pooling + classifier head ---
    @pl.when(layer == pl.num_programs(1) - 1)
    def _():
        pool = pool_ref[...]                                     # (2, L) f32
        # NOTE: like the PyTorch reference, no zero-count clamp on the sums.
        pool = pool / jnp.sum(pool, axis=-1, keepdims=True)      # exact division
        means = jnp.dot(pool, h, preferred_element_type=f32)     # (2, H)
        # dropout == identity (eval);  cat([t, p]) @ W1 == t@W1[:H] + p@W1[H:]
        lin = (jnp.dot(means[0:1].astype(bf16), w1t_ref[...],
                       preferred_element_type=f32)
               + jnp.dot(means[1:2].astype(bf16), w1p_ref[...],
                         preferred_element_type=f32)
               + b1_ref[...])
        lin = jnp.maximum(lin, 0.0)                              # ReLU
        o_ref[...] = (jnp.dot(lin.astype(bf16), w2_ref[...],
                              preferred_element_type=f32)
                      + b2_ref[...]).astype(o_ref.dtype)         # (1, 128)


# ----------------------------------------------------------------------------
# Forward pass (mirrors the PyTorch module)
# ----------------------------------------------------------------------------

def bert_classifier_forward(params, input_ids, attention_mask, token_type_ids,
                            *, cfg):
    B, L = input_ids.shape
    H = cfg["hidden"]
    nH = cfg["heads"]
    dh = H // nH
    nl = params["wqkv"].shape[0]
    I = params["wff1"].shape[2]
    C = params["w_out"].shape[1]
    C_pad = 128 * ((C + 127) // 128)            # lane-dense logits slab
    bf16 = jnp.bfloat16
    f32 = jnp.float32

    # --- embeddings (gather stays in XLA) + additive attention-mask bias ---
    emb = (params["word_emb"][input_ids]
           + params["pos_emb"][None, :L, :]
           + params["type_emb"][token_type_ids])                 # (B, L, H)
    # BERT sees the ORIGINAL mask (the PyTorch in-place edits happen after).
    bias = ((1.0 - attention_mask.astype(f32)) * -10000.0).reshape(B, 1, L)

    # --- PyTorch post-encoder mask edits (functional equivalent) ---
    att = attention_mask.at[:, 0].set(0)
    seg = token_type_ids
    idx = jnp.arange(L, dtype=att.dtype)
    indices_seg = jnp.argmax(seg * idx, axis=1)                  # (B,)
    indices_att = jnp.argmax((att - seg) * idx, axis=1)          # (B,)
    seg = seg.at[jnp.arange(B), indices_seg].set(0)              # seg[seg_id] = 0
    att = jnp.where(idx[None, :] >= indices_att[:, None], 0, att)  # att[att_id:] = 0
    pool = jnp.stack([att.astype(f32), seg.astype(f32)], axis=1)   # (B, 2, L)

    # --- weight layout prep (head-major slabs) + bf16 cast for the MXU ---
    wqkv = params["wqkv"]                                        # (nl, H, 3H)
    bqkv = params["bqkv"]                                        # (nl, 1, 3H)

    def heads_w(w):   # (nl, H, H) -> (nl, nH, H, dh)
        return w.reshape(nl, H, nH, dh).transpose(0, 2, 1, 3)

    def heads_b(b):   # (nl, 1, H) -> (nl, nH, 1, dh)
        return b.reshape(nl, 1, nH, dh).transpose(0, 2, 1, 3)

    wq = heads_w(wqkv[:, :, 0:H]).astype(bf16)
    wk = heads_w(wqkv[:, :, H:2 * H]).astype(bf16)
    wv = heads_w(wqkv[:, :, 2 * H:3 * H]).astype(bf16)
    bq = heads_b(bqkv[:, :, 0:H])
    bk = heads_b(bqkv[:, :, H:2 * H])
    bv = heads_b(bqkv[:, :, 2 * H:3 * H])
    wo = params["wo"].reshape(nl, nH, dh, H).astype(bf16)        # (nl, nH, dh, H)
    wff1 = params["wff1"].astype(bf16)
    wff2 = params["wff2"].astype(bf16)
    w1t = params["w_lin"][:H].astype(bf16)
    w1p = params["w_lin"][H:].astype(bf16)
    w_out = jnp.pad(params["w_out"], ((0, 0), (0, C_pad - C))).astype(bf16)
    b_out = jnp.pad(params["b_out"], ((0, 0), (0, C_pad - C)))

    kern = functools.partial(_bert_layer_kernel, num_heads=nH, seq_len=L,
                             hidden=H, scale=1.0 / math.sqrt(dh))

    const2 = lambda b, l: (0, 0)           # resident, loaded once
    per_b = lambda b, l: (b, 0, 0)         # per-batch-row, resident across layers
    per_l3 = lambda b, l: (l, 0, 0)        # streamed per layer
    per_l4 = lambda b, l: (l, 0, 0, 0)

    in_specs = [
        pl.BlockSpec((None, L, H), per_b),          # emb
        pl.BlockSpec((None, 1, L), per_b),          # mask bias
        pl.BlockSpec((None, 2, L), per_b),          # pooling masks (txt, topic)
        pl.BlockSpec((1, H), const2),               # emb_ln_g
        pl.BlockSpec((1, H), const2),               # emb_ln_b
        pl.BlockSpec((None, nH, H, dh), per_l4),    # wq
        pl.BlockSpec((None, nH, H, dh), per_l4),    # wk
        pl.BlockSpec((None, nH, H, dh), per_l4),    # wv
        pl.BlockSpec((None, nH, 1, dh), per_l4),    # bq
        pl.BlockSpec((None, nH, 1, dh), per_l4),    # bk
        pl.BlockSpec((None, nH, 1, dh), per_l4),    # bv
        pl.BlockSpec((None, nH, dh, H), per_l4),    # wo
        pl.BlockSpec((None, 1, H), per_l3),         # bo
        pl.BlockSpec((None, 1, H), per_l3),         # ln1_g
        pl.BlockSpec((None, 1, H), per_l3),         # ln1_b
        pl.BlockSpec((None, H, I), per_l3),         # wff1
        pl.BlockSpec((None, 1, I), per_l3),         # bff1
        pl.BlockSpec((None, I, H), per_l3),         # wff2
        pl.BlockSpec((None, 1, H), per_l3),         # bff2
        pl.BlockSpec((None, 1, H), per_l3),         # ln2_g
        pl.BlockSpec((None, 1, H), per_l3),         # ln2_b
        pl.BlockSpec((H, H), const2),               # w1 (text half)
        pl.BlockSpec((H, H), const2),               # w1 (topic half)
        pl.BlockSpec((1, H), const2),               # b1
        pl.BlockSpec((H, C_pad), const2),           # w_out (lane padded)
        pl.BlockSpec((1, C_pad), const2),           # b_out (lane padded)
    ]

    out = pl.pallas_call(
        kern,
        out_shape=jax.ShapeDtypeStruct((B, 1, C_pad), jnp.float32),
        grid=(B, nl),                               # (parallel batch, arbitrary layers)
        in_specs=in_specs,
        out_specs=pl.BlockSpec((None, 1, C_pad), per_b),
        scratch_shapes=[pltpu.VMEM((L, H), jnp.float32)],   # resident activations
        compiler_params=pltpu.CompilerParams(
            dimension_semantics=("parallel", "arbitrary"),
            vmem_limit_bytes=32 * 1024 * 1024),
    )(emb, bias, pool,
      params["emb_ln_g"], params["emb_ln_b"],
      wq, wk, wv, bq, bk, bv, wo,
      params["bo"], params["ln1_g"], params["ln1_b"],
      wff1, params["bff1"], wff2, params["bff2"],
      params["ln2_g"], params["ln2_b"],
      w1t, w1p, params["b_lin"], w_out, b_out)

    return out[:, 0, :C]


# ----------------------------------------------------------------------------
# Deterministic parameter init (synthetic, small-shape BERT), layer-stacked
# ----------------------------------------------------------------------------

def init_params(key, *, vocab=50, type_vocab=2, max_pos=8, hidden=32,
                heads=2, layers=2, intermediate=64, num_labels=3):
    del heads  # head count is static config, not a parameter shape here
    H, I, nl = hidden, intermediate, layers
    std = 0.02
    k = jax.random.split(key, 9)

    def w(shape, kk):
        return jax.random.normal(kk, shape, jnp.float32) * std

    return {
        "word_emb": w((vocab, H), k[0]),
        "pos_emb": w((max_pos, H), k[1]),
        "type_emb": w((type_vocab, H), k[2]),
        "emb_ln_g": jnp.ones((1, H), jnp.float32),
        "emb_ln_b": jnp.zeros((1, H), jnp.float32),
        # per-layer weights stacked on a leading num_layers axis
        "wqkv": w((nl, H, 3 * H), k[3]),
        "bqkv": jnp.zeros((nl, 1, 3 * H), jnp.float32),
        "wo": w((nl, H, H), k[4]),
        "bo": jnp.zeros((nl, 1, H), jnp.float32),
        "ln1_g": jnp.ones((nl, 1, H), jnp.float32),
        "ln1_b": jnp.zeros((nl, 1, H), jnp.float32),
        "wff1": w((nl, H, I), k[5]),
        "bff1": jnp.zeros((nl, 1, I), jnp.float32),
        "wff2": w((nl, I, H), k[6]),
        "bff2": jnp.zeros((nl, 1, H), jnp.float32),
        "ln2_g": jnp.ones((nl, 1, H), jnp.float32),
        "ln2_b": jnp.zeros((nl, 1, H), jnp.float32),
        # classifier head: Linear(2H -> H), Linear(H -> num_labels)
        "w_lin": w((2 * H, H), k[7]),
        "b_lin": jnp.zeros((1, H), jnp.float32),
        "w_out": w((H, num_labels), k[8]),
        "b_out": jnp.zeros((1, num_labels), jnp.float32),
    }


# ----------------------------------------------------------------------------

if __name__ == "__main__":
    B, L = 2, 8
    NUM_LABELS = 3
    cfg = {"hidden": 32, "heads": 2}          # static config (NOT traced by jit)

    key = jax.random.PRNGKey(0)
    pkey, ikey = jax.random.split(key)
    params = init_params(pkey, max_pos=L, hidden=cfg["hidden"], heads=cfg["heads"],
                         layers=2, intermediate=64, num_labels=NUM_LABELS)

    input_ids = jax.random.randint(ikey, (B, L), 0, 50, dtype=jnp.int32)
    # [CLS] text ... [SEP] topic ... [SEP] [PAD]...
    attention_mask = jnp.array([[1, 1, 1, 1, 1, 1, 1, 0],
                                [1, 1, 1, 1, 1, 1, 0, 0]], dtype=jnp.int32)
    token_type_ids = jnp.array([[0, 0, 0, 0, 1, 1, 1, 0],
                                [0, 0, 0, 1, 1, 1, 0, 0]], dtype=jnp.int32)

    fwd = jax.jit(functools.partial(bert_classifier_forward, cfg=cfg))
    out = fwd(params, input_ids, attention_mask, token_type_ids)
    out = jax.block_until_ready(out)
    assert out.shape == (B, NUM_LABELS)
    print("KERNEL_OK")
</pallas_src>

<mosaic_0001>
module attributes {stable_mosaic.version = 11 : i64} {
  func.func @_bert_layer_kernel(%arg0: i32, %arg1: i32, %arg2: memref<1x8x32xf32, #tpu.memory_space<vmem>>, %arg3: memref<1x1x8xf32, #tpu.memory_space<vmem>>, %arg4: memref<1x2x8xf32, #tpu.memory_space<vmem>>, %arg5: memref<1x32xf32, #tpu.memory_space<vmem>>, %arg6: memref<1x32xf32, #tpu.memory_space<vmem>>, %arg7: memref<1x2x32x16xbf16, #tpu.memory_space<vmem>>, %arg8: memref<1x2x32x16xbf16, #tpu.memory_space<vmem>>, %arg9: memref<1x2x32x16xbf16, #tpu.memory_space<vmem>>, %arg10: memref<1x2x1x16xf32, #tpu.memory_space<vmem>>, %arg11: memref<1x2x1x16xf32, #tpu.memory_space<vmem>>, %arg12: memref<1x2x1x16xf32, #tpu.memory_space<vmem>>, %arg13: memref<1x2x16x32xbf16, #tpu.memory_space<vmem>>, %arg14: memref<1x1x32xf32, #tpu.memory_space<vmem>>, %arg15: memref<1x1x32xf32, #tpu.memory_space<vmem>>, %arg16: memref<1x1x32xf32, #tpu.memory_space<vmem>>, %arg17: memref<1x32x64xbf16, #tpu.memory_space<vmem>>, %arg18: memref<1x1x64xf32, #tpu.memory_space<vmem>>, %arg19: memref<1x64x32xbf16, #tpu.memory_space<vmem>>, %arg20: memref<1x1x32xf32, #tpu.memory_space<vmem>>, %arg21: memref<1x1x32xf32, #tpu.memory_space<vmem>>, %arg22: memref<1x1x32xf32, #tpu.memory_space<vmem>>, %arg23: memref<32x32xbf16, #tpu.memory_space<vmem>>, %arg24: memref<32x32xbf16, #tpu.memory_space<vmem>>, %arg25: memref<1x32xf32, #tpu.memory_space<vmem>>, %arg26: memref<32x128xbf16, #tpu.memory_space<vmem>>, %arg27: memref<1x128xf32, #tpu.memory_space<vmem>>, %arg28: memref<1x1x128xf32, #tpu.memory_space<vmem>>, %arg29: memref<8x32xf32, #tpu.memory_space<vmem>>) attributes {dimension_semantics = [#tpu.dimension_semantics<parallel>, #tpu.dimension_semantics<arbitrary>], iteration_bounds = array<i64: 2, 2>, scalar_prefetch = 0 : i64, scratch_operands = 1 : i64, tpu.core_type = #tpu.core_type<tc>, window_params = [{transform_indices = @transform_0, window_bounds = array<i64: 1, 8, 32>}, {transform_indices = @transform_1, window_bounds = array<i64: 1, 1, 8>}, {transform_indices = @transform_2, window_bounds = array<i64: 1, 2, 8>}, {pipeline_mode = #tpu.pipeline_mode<synchronous>, transform_indices = @transform_3, window_bounds = array<i64: 1, 32>}, {pipeline_mode = #tpu.pipeline_mode<synchronous>, transform_indices = @transform_4, window_bounds = array<i64: 1, 32>}, {transform_indices = @transform_5, window_bounds = array<i64: 1, 2, 32, 16>}, {transform_indices = @transform_6, window_bounds = array<i64: 1, 2, 32, 16>}, {transform_indices = @transform_7, window_bounds = array<i64: 1, 2, 32, 16>}, {transform_indices = @transform_8, window_bounds = array<i64: 1, 2, 1, 16>}, {transform_indices = @transform_9, window_bounds = array<i64: 1, 2, 1, 16>}, {transform_indices = @transform_10, window_bounds = array<i64: 1, 2, 1, 16>}, {transform_indices = @transform_11, window_bounds = array<i64: 1, 2, 16, 32>}, {transform_indices = @transform_12, window_bounds = array<i64: 1, 1, 32>}, {transform_indices = @transform_13, window_bounds = array<i64: 1, 1, 32>}, {transform_indices = @transform_14, window_bounds = array<i64: 1, 1, 32>}, {transform_indices = @transform_15, window_bounds = array<i64: 1, 32, 64>}, {transform_indices = @transform_16, window_bounds = array<i64: 1, 1, 64>}, {transform_indices = @transform_17, window_bounds = array<i64: 1, 64, 32>}, {transform_indices = @transform_18, window_bounds = array<i64: 1, 1, 32>}, {transform_indices = @transform_19, window_bounds = array<i64: 1, 1, 32>}, {transform_indices = @transform_20, window_bounds = array<i64: 1, 1, 32>}, {pipeline_mode = #tpu.pipeline_mode<synchronous>, transform_indices = @transform_21, window_bounds = array<i64: 32, 32>}, {pipeline_mode = #tpu.pipeline_mode<synchronous>, transform_indices = @transform_22, window_bounds = array<i64: 32, 32>}, {pipeline_mode = #tpu.pipeline_mode<synchronous>, transform_indices = @transform_23, window_bounds = array<i64: 1, 32>}, {pipeline_mode = #tpu.pipeline_mode<synchronous>, transform_indices = @transform_24, window_bounds = array<i64: 32, 128>}, {pipeline_mode = #tpu.pipeline_mode<synchronous>, transform_indices = @transform_25, window_bounds = array<i64: 1, 128>}, {transform_indices = @transform_26, window_bounds = array<i64: 1, 1, 128>}]} {
    %c0_i32 = arith.constant 0 : i32
    %0 = arith.cmpi eq, %arg1, %c0_i32 : i32
    %1 = arith.extui %0 : i1 to i32
    %c0_i32_0 = arith.constant 0 : i32
    %2 = arith.cmpi ne, %1, %c0_i32_0 : i32
    scf.if %2 {
      %c0_88 = arith.constant 0 : index
      %c0_89 = arith.constant 0 : index
      %c0_90 = arith.constant 0 : index
      %148 = vector.load %arg2[%c0_88, %c0_89, %c0_90] : memref<1x8x32xf32, #tpu.memory_space<vmem>>, vector<1x8x32xf32>
      %149 = vector.shape_cast %148 : vector<1x8x32xf32> to vector<8x32xf32>
      %c0_91 = arith.constant 0 : index
      %c0_92 = arith.constant 0 : index
      %150 = vector.load %arg5[%c0_91, %c0_92] : memref<1x32xf32, #tpu.memory_space<vmem>>, vector<1x32xf32>
      %c0_93 = arith.constant 0 : index
      %c0_94 = arith.constant 0 : index
      %151 = vector.load %arg6[%c0_93, %c0_94] : memref<1x32xf32, #tpu.memory_space<vmem>>, vector<1x32xf32>
      %cst_95 = arith.constant dense<0.000000e+00> : vector<8xf32>
      %152 = vector.multi_reduction <add>, %149, %cst_95 [1] : vector<8x32xf32> to vector<8xf32>
      %153 = vector.shape_cast %152 : vector<8xf32> to vector<8x1xf32>
      %cst_96 = arith.constant 3.200000e+01 : f32
      %154 = vector.broadcast %cst_96 : f32 to vector<8x1xf32>
      %155 = arith.divf %153, %154 : vector<8x1xf32>
      %156 = vector.broadcast %155 : vector<8x1xf32> to vector<8x32xf32>
      %157 = arith.subf %149, %156 : vector<8x32xf32>
      %158 = arith.mulf %157, %157 : vector<8x32xf32>
      %cst_97 = arith.constant dense<0.000000e+00> : vector<8xf32>
      %159 = vector.multi_reduction <add>, %158, %cst_97 [1] : vector<8x32xf32> to vector<8xf32>
      %160 = vector.shape_cast %159 : vector<8xf32> to vector<8x1xf32>
      %cst_98 = arith.constant 3.200000e+01 : f32
      %161 = vector.broadcast %cst_98 : f32 to vector<8x1xf32>
      %162 = arith.divf %160, %161 : vector<8x1xf32>
      %163 = vector.broadcast %155 : vector<8x1xf32> to vector<8x32xf32>
      %164 = arith.subf %149, %163 : vector<8x32xf32>
      %cst_99 = arith.constant 9.99999996E-13 : f32
      %165 = vector.broadcast %cst_99 : f32 to vector<8x1xf32>
      %166 = arith.addf %162, %165 : vector<8x1xf32>
      %167 = math.rsqrt %166 : vector<8x1xf32>
      %168 = vector.broadcast %167 : vector<8x1xf32> to vector<8x32xf32>
      %169 = arith.mulf %164, %168 : vector<8x32xf32>
      %170 = vector.broadcast %150 : vector<1x32xf32> to vector<8x32xf32>
      %171 = arith.mulf %169, %170 : vector<8x32xf32>
      %172 = vector.broadcast %151 : vector<1x32xf32> to vector<8x32xf32>
      %173 = arith.addf %171, %172 : vector<8x32xf32>
      %c0_100 = arith.constant 0 : index
      %c0_101 = arith.constant 0 : index
      %174 = vector.load %arg29[%c0_100, %c0_101] : memref<8x32xf32, #tpu.memory_space<vmem>>, vector<8x32xf32>
      tpu.vector_store %arg29[%c0_100, %c0_101], %173 {strides = array<i32>} : memref<8x32xf32, #tpu.memory_space<vmem>>, vector<8x32xf32>,
    } else {
    }
    %c0 = arith.constant 0 : index
    %c0_1 = arith.constant 0 : index
    %3 = vector.load %arg29[%c0, %c0_1] : memref<8x32xf32, #tpu.memory_space<vmem>>, vector<8x32xf32>
    %4 = arith.truncf %3 : vector<8x32xf32> to vector<8x32xbf16>
    %5 = vector.shape_cast %4 : vector<8x32xbf16> to vector<1x8x32xbf16>
    %6 = vector.shape_cast %5 : vector<1x8x32xbf16> to vector<1x8x32xbf16>
    %7 = vector.broadcast %6 : vector<1x8x32xbf16> to vector<2x8x32xbf16>
    %c0_2 = arith.constant 0 : index
    %c0_3 = arith.constant 0 : index
    %c0_4 = arith.constant 0 : index
    %c0_5 = arith.constant 0 : index
    %8 = vector.load %arg7[%c0_2, %c0_3, %c0_4, %c0_5] : memref<1x2x32x16xbf16, #tpu.memory_space<vmem>>, vector<1x2x32x16xbf16>
    %9 = vector.shape_cast %8 : vector<1x2x32x16xbf16> to vector<2x32x16xbf16>
    "tpu.trace_start"() <{level = 10 : i32, message = "hld,hdk->hlk"}> : () -> ()
    %cst = arith.constant dense<0.000000e+00> : vector<2x8x16xf32>
    %10 = tpu.matmul %7, %9, %cst {dimension_numbers = #tpu.dot_dimension_numbers<[2], [1], [1], [2], [0, 0, 0, 1, 1, 2], [0], [0]>} : vector<2x8x32xbf16>, vector<2x32x16xbf16>, vector<2x8x16xf32> -> vector<2x8x16xf32>
    "tpu.trace_stop"() : () -> ()
    %c0_6 = arith.constant 0 : index
    %c0_7 = arith.constant 0 : index
    %c0_8 = arith.constant 0 : index
    %c0_9 = arith.constant 0 : index
    %11 = vector.load %arg10[%c0_6, %c0_7, %c0_8, %c0_9] : memref<1x2x1x16xf32, #tpu.memory_space<vmem>>, vector<1x2x1x16xf32>
    %12 = vector.shape_cast %11 : vector<1x2x1x16xf32> to vector<2x1x16xf32>
    %13 = vector.broadcast %12 : vector<2x1x16xf32> to vector<2x8x16xf32>
    %14 = arith.addf %10, %13 : vector<2x8x16xf32>
    %c0_10 = arith.constant 0 : index
    %c0_11 = arith.constant 0 : index
    %c0_12 = arith.constant 0 : index
    %c0_13 = arith.constant 0 : index
    %15 = vector.load %arg8[%c0_10, %c0_11, %c0_12, %c0_13] : memref<1x2x32x16xbf16, #tpu.memory_space<vmem>>, vector<1x2x32x16xbf16>
    %16 = vector.shape_cast %15 : vector<1x2x32x16xbf16> to vector<2x32x16xbf16>
    "tpu.trace_start"() <{level = 10 : i32, message = "hld,hdk->hlk"}> : () -> ()
    %cst_14 = arith.constant dense<0.000000e+00> : vector<2x8x16xf32>
    %17 = tpu.matmul %7, %16, %cst_14 {dimension_numbers = #tpu.dot_dimension_numbers<[2], [1], [1], [2], [0, 0, 0, 1, 1, 2], [0], [0]>} : vector<2x8x32xbf16>, vector<2x32x16xbf16>, vector<2x8x16xf32> -> vector<2x8x16xf32>
    "tpu.trace_stop"() : () -> ()
    %c0_15 = arith.constant 0 : index
    %c0_16 = arith.constant 0 : index
    %c0_17 = arith.constant 0 : index
    %c0_18 = arith.constant 0 : index
    %18 = vector.load %arg11[%c0_15, %c0_16, %c0_17, %c0_18] : memref<1x2x1x16xf32, #tpu.memory_space<vmem>>, vector<1x2x1x16xf32>
    %19 = vector.shape_cast %18 : vector<1x2x1x16xf32> to vector<2x1x16xf32>
    %20 = vector.broadcast %19 : vector<2x1x16xf32> to vector<2x8x16xf32>
    %21 = arith.addf %17, %20 : vector<2x8x16xf32>
    %c0_19 = arith.constant 0 : index
    %c0_20 = arith.constant 0 : index
    %c0_21 = arith.constant 0 : index
    %c0_22 = arith.constant 0 : index
    %22 = vector.load %arg9[%c0_19, %c0_20, %c0_21, %c0_22] : memref<1x2x32x16xbf16, #tpu.memory_space<vmem>>, vector<1x2x32x16xbf16>
    %23 = vector.shape_cast %22 : vector<1x2x32x16xbf16> to vector<2x32x16xbf16>
    "tpu.trace_start"() <{level = 10 : i32, message = "hld,hdk->hlk"}> : () -> ()
    %cst_23 = arith.constant dense<0.000000e+00> : vector<2x8x16xf32>
    %24 = tpu.matmul %7, %23, %cst_23 {dimension_numbers = #tpu.dot_dimension_numbers<[2], [1], [1], [2], [0, 0, 0, 1, 1, 2], [0], [0]>} : vector<2x8x32xbf16>, vector<2x32x16xbf16>, vector<2x8x16xf32> -> vector<2x8x16xf32>
    "tpu.trace_stop"() : () -> ()
    %c0_24 = arith.constant 0 : index
    %c0_25 = arith.constant 0 : index
    %c0_26 = arith.constant 0 : index
    %c0_27 = arith.constant 0 : index
    %25 = vector.load %arg12[%c0_24, %c0_25, %c0_26, %c0_27] : memref<1x2x1x16xf32, #tpu.memory_space<vmem>>, vector<1x2x1x16xf32>
    %26 = vector.shape_cast %25 : vector<1x2x1x16xf32> to vector<2x1x16xf32>
    %27 = vector.broadcast %26 : vector<2x1x16xf32> to vector<2x8x16xf32>
    %28 = arith.addf %24, %27 : vector<2x8x16xf32>
    %29 = arith.truncf %14 : vector<2x8x16xf32> to vector<2x8x16xbf16>
    %30 = arith.truncf %21 : vector<2x8x16xf32> to vector<2x8x16xbf16>
    "tpu.trace_start"() <{level = 10 : i32, message = "hqd,hkd->hqk"}> : () -> ()
    %cst_28 = arith.constant dense<0.000000e+00> : vector<2x8x8xf32>
    %31 = tpu.matmul %29, %30, %cst_28 {dimension_numbers = #tpu.dot_dimension_numbers<[2], [2], [1], [1], [0, 0, 0, 1, 1, 1], [0], [0]>} : vector<2x8x16xbf16>, vector<2x8x16xbf16>, vector<2x8x8xf32> -> vector<2x8x8xf32>
    "tpu.trace_stop"() : () -> ()
    %cst_29 = arith.constant 2.500000e-01 : f32
    %32 = vector.broadcast %cst_29 : f32 to vector<2x8x8xf32>
    %33 = arith.mulf %31, %32 : vector<2x8x8xf32>
    %c0_30 = arith.constant 0 : index
    %c0_31 = arith.constant 0 : index
    %c0_32 = arith.constant 0 : index
    %34 = vector.load %arg3[%c0_30, %c0_31, %c0_32] : memref<1x1x8xf32, #tpu.memory_space<vmem>>, vector<1x1x8xf32>
    %35 = vector.shape_cast %34 : vector<1x1x8xf32> to vector<1x8xf32>
    %36 = vector.shape_cast %35 : vector<1x8xf32> to vector<1x1x8xf32>
    %37 = vector.broadcast %36 : vector<1x1x8xf32> to vector<2x8x8xf32>
    %38 = arith.addf %33, %37 : vector<2x8x8xf32>
    %cst_33 = arith.constant dense<0xFF800000> : vector<2x8xf32>
    %39 = vector.multi_reduction <maximumf>, %38, %cst_33 [2] : vector<2x8x8xf32> to vector<2x8xf32>
    %40 = vector.shape_cast %39 : vector<2x8xf32> to vector<2x8x1xf32>
    %41 = vector.broadcast %40 : vector<2x8x1xf32> to vector<2x8x8xf32>
    %42 = arith.subf %38, %41 : vector<2x8x8xf32>
    %43 = math.exp %42 : vector<2x8x8xf32>
    %cst_34 = arith.constant dense<0.000000e+00> : vector<2x8xf32>
    %44 = vector.multi_reduction <add>, %43, %cst_34 [2] : vector<2x8x8xf32> to vector<2x8xf32>
    %45 = vector.shape_cast %44 : vector<2x8xf32> to vector<2x8x1xf32>
    %46 = tpu.reciprocal %45 {approx = true} : vector<2x8x1xf32> -> vector<2x8x1xf32>
    %47 = vector.broadcast %46 : vector<2x8x1xf32> to vector<2x8x8xf32>
    %48 = arith.mulf %43, %47 : vector<2x8x8xf32>
    %49 = arith.truncf %48 : vector<2x8x8xf32> to vector<2x8x8xbf16>
    %50 = arith.truncf %28 : vector<2x8x16xf32> to vector<2x8x16xbf16>
    "tpu.trace_start"() <{level = 10 : i32, message = "hqk,hkd->hqd"}> : () -> ()
    %cst_35 = arith.constant dense<0.000000e+00> : vector<2x8x16xf32>
    %51 = tpu.matmul %49, %50, %cst_35 {dimension_numbers = #tpu.dot_dimension_numbers<[2], [1], [1], [2], [0, 0, 0, 1, 1, 2], [0], [0]>} : vector<2x8x8xbf16>, vector<2x8x16xbf16>, vector<2x8x16xf32> -> vector<2x8x16xf32>
    "tpu.trace_stop"() : () -> ()
    %52 = arith.truncf %51 : vector<2x8x16xf32> to vector<2x8x16xbf16>
    %c0_36 = arith.constant 0 : index
    %c0_37 = arith.constant 0 : index
    %c0_38 = arith.constant 0 : index
    %c0_39 = arith.constant 0 : index
    %53 = vector.load %arg13[%c0_36, %c0_37, %c0_38, %c0_39] : memref<1x2x16x32xbf16, #tpu.memory_space<vmem>>, vector<1x2x16x32xbf16>
    %54 = vector.shape_cast %53 : vector<1x2x16x32xbf16> to vector<2x16x32xbf16>
    "tpu.trace_start"() <{level = 10 : i32, message = "hqd,hdo->hqo"}> : () -> ()
    %cst_40 = arith.constant dense<0.000000e+00> : vector<2x8x32xf32>
    %55 = tpu.matmul %52, %54, %cst_40 {dimension_numbers = #tpu.dot_dimension_numbers<[2], [1], [1], [2], [0, 0, 0, 1, 1, 2], [0], [0]>} : vector<2x8x16xbf16>, vector<2x16x32xbf16>, vector<2x8x32xf32> -> vector<2x8x32xf32>
    "tpu.trace_stop"() : () -> ()
    %cst_41 = arith.constant dense<0.000000e+00> : vector<8x32xf32>
    %56 = vector.multi_reduction <add>, %55, %cst_41 [0] : vector<2x8x32xf32> to vector<8x32xf32>
    %c0_42 = arith.constant 0 : index
    %c0_43 = arith.constant 0 : index
    %c0_44 = arith.constant 0 : index
    %57 = vector.load %arg14[%c0_42, %c0_43, %c0_44] : memref<1x1x32xf32, #tpu.memory_space<vmem>>, vector<1x1x32xf32>
    %58 = vector.shape_cast %57 : vector<1x1x32xf32> to vector<1x32xf32>
    %59 = vector.broadcast %58 : vector<1x32xf32> to vector<8x32xf32>
    %60 = arith.addf %56, %59 : vector<8x32xf32>
    %61 = arith.addf %3, %60 : vector<8x32xf32>
    %c0_45 = arith.constant 0 : index
    %c0_46 = arith.constant 0 : index
    %c0_47 = arith.constant 0 : index
    %62 = vector.load %arg15[%c0_45, %c0_46, %c0_47] : memref<1x1x32xf32, #tpu.memory_space<vmem>>, vector<1x1x32xf32>
    %63 = vector.shape_cast %62 : vector<1x1x32xf32> to vector<1x32xf32>
    %c0_48 = arith.constant 0 : index
    %c0_49 = arith.constant 0 : index
    %c0_50 = arith.constant 0 : index
    %64 = vector.load %arg16[%c0_48, %c0_49, %c0_50] : memref<1x1x32xf32, #tpu.memory_space<vmem>>, vector<1x1x32xf32>
    %65 = vector.shape_cast %64 : vector<1x1x32xf32> to vector<1x32xf32>
    %cst_51 = arith.constant dense<0.000000e+00> : vector<8xf32>
    %66 = vector.multi_reduction <add>, %61, %cst_51 [1] : vector<8x32xf32> to vector<8xf32>
    %67 = vector.shape_cast %66 : vector<8xf32> to vector<8x1xf32>
    %cst_52 = arith.constant 3.200000e+01 : f32
    %68 = vector.broadcast %cst_52 : f32 to vector<8x1xf32>
    %69 = arith.divf %67, %68 : vector<8x1xf32>
    %70 = vector.broadcast %69 : vector<8x1xf32> to vector<8x32xf32>
    %71 = arith.subf %61, %70 : vector<8x32xf32>
    %72 = arith.mulf %71, %71 : vector<8x32xf32>
    %cst_53 = arith.constant dense<0.000000e+00> : vector<8xf32>
    %73 = vector.multi_reduction <add>, %72, %cst_53 [1] : vector<8x32xf32> to vector<8xf32>
    %74 = vector.shape_cast %73 : vector<8xf32> to vector<8x1xf32>
    %cst_54 = arith.constant 3.200000e+01 : f32
    %75 = vector.broadcast %cst_54 : f32 to vector<8x1xf32>
    %76 = arith.divf %74, %75 : vector<8x1xf32>
    %77 = vector.broadcast %69 : vector<8x1xf32> to vector<8x32xf32>
    %78 = arith.subf %61, %77 : vector<8x32xf32>
    %cst_55 = arith.constant 9.99999996E-13 : f32
    %79 = vector.broadcast %cst_55 : f32 to vector<8x1xf32>
    %80 = arith.addf %76, %79 : vector<8x1xf32>
    %81 = math.rsqrt %80 : vector<8x1xf32>
    %82 = vector.broadcast %81 : vector<8x1xf32> to vector<8x32xf32>
    %83 = arith.mulf %78, %82 : vector<8x32xf32>
    %84 = vector.broadcast %63 : vector<1x32xf32> to vector<8x32xf32>
    %85 = arith.mulf %83, %84 : vector<8x32xf32>
    %86 = vector.broadcast %65 : vector<1x32xf32> to vector<8x32xf32>
    %87 = arith.addf %85, %86 : vector<8x32xf32>
    %88 = arith.truncf %87 : vector<8x32xf32> to vector<8x32xbf16>
    %c0_56 = arith.constant 0 : index
    %c0_57 = arith.constant 0 : index
    %c0_58 = arith.constant 0 : index
    %89 = vector.load %arg17[%c0_56, %c0_57, %c0_58] : memref<1x32x64xbf16, #tpu.memory_space<vmem>>, vector<1x32x64xbf16>
    %90 = vector.shape_cast %89 : vector<1x32x64xbf16> to vector<32x64xbf16>
    %cst_59 = arith.constant dense<0.000000e+00> : vector<8x64xf32>
    %91 = tpu.matmul %88, %90, %cst_59 {dimension_numbers = #tpu.dot_dimension_numbers<[1], [0], [0], [1], [0, 0, 1, 1], [], []>} : vector<8x32xbf16>, vector<32x64xbf16>, vector<8x64xf32> -> vector<8x64xf32>
    %c0_60 = arith.constant 0 : index
    %c0_61 = arith.constant 0 : index
    %c0_62 = arith.constant 0 : index
    %92 = vector.load %arg18[%c0_60, %c0_61, %c0_62] : memref<1x1x64xf32, #tpu.memory_space<vmem>>, vector<1x1x64xf32>
    %93 = vector.shape_cast %92 : vector<1x1x64xf32> to vector<1x64xf32>
    %94 = vector.broadcast %93 : vector<1x64xf32> to vector<8x64xf32>
    %95 = arith.addf %91, %94 : vector<8x64xf32>
    %96 = arith.mulf %95, %95 : vector<8x64xf32>
    %97 = arith.mulf %95, %96 : vector<8x64xf32>
    %cst_63 = arith.constant 4.471500e-02 : f32
    %98 = vector.broadcast %cst_63 : f32 to vector<8x64xf32>
    %99 = arith.mulf %98, %97 : vector<8x64xf32>
    %100 = arith.addf %95, %99 : vector<8x64xf32>
    %cst_64 = arith.constant 0.797884583 : f32
    %101 = vector.broadcast %cst_64 : f32 to vector<8x64xf32>
    %102 = arith.mulf %101, %100 : vector<8x64xf32>
    %103 = math.tanh %102 : vector<8x64xf32>
    %cst_65 = arith.constant 1.000000e+00 : f32
    %104 = vector.broadcast %cst_65 : f32 to vector<8x64xf32>
    %105 = arith.addf %104, %103 : vector<8x64xf32>
    %cst_66 = arith.constant 5.000000e-01 : f32
    %106 = vector.broadcast %cst_66 : f32 to vector<8x64xf32>
    %107 = arith.mulf %106, %105 : vector<8x64xf32>
    %108 = arith.mulf %95, %107 : vector<8x64xf32>
    %109 = arith.truncf %108 : vector<8x64xf32> to vector<8x64xbf16>
    %c0_67 = arith.constant 0 : index
    %c0_68 = arith.constant 0 : index
    %c0_69 = arith.constant 0 : index
    %110 = vector.load %arg19[%c0_67, %c0_68, %c0_69] : memref<1x64x32xbf16, #tpu.memory_space<vmem>>, vector<1x64x32xbf16>
    %111 = vector.shape_cast %110 : vector<1x64x32xbf16> to vector<64x32xbf16>
    %cst_70 = arith.constant dense<0.000000e+00> : vector<8x32xf32>
    %112 = tpu.matmul %109, %111, %cst_70 {dimension_numbers = #tpu.dot_dimension_numbers<[1], [0], [0], [1], [0, 0, 1, 1], [], []>} : vector<8x64xbf16>, vector<64x32xbf16>, vector<8x32xf32> -> vector<8x32xf32>
    %c0_71 = arith.constant 0 : index
    %c0_72 = arith.constant 0 : index
    %c0_73 = arith.constant 0 : index
    %113 = vector.load %arg20[%c0_71, %c0_72, %c0_73] : memref<1x1x32xf32, #tpu.memory_space<vmem>>, vector<1x1x32xf32>
    %114 = vector.shape_cast %113 : vector<1x1x32xf32> to vector<1x32xf32>
    %115 = vector.broadcast %114 : vector<1x32xf32> to vector<8x32xf32>
    %116 = arith.addf %112, %115 : vector<8x32xf32>
    %117 = arith.addf %87, %116 : vector<8x32xf32>
    %c0_74 = arith.constant 0 : index
    %c0_75 = arith.constant 0 : index
    %c0_76 = arith.constant 0 : index
    %118 = vector.load %arg21[%c0_74, %c0_75, %c0_76] : memref<1x1x32xf32, #tpu.memory_space<vmem>>, vector<1x1x32xf32>
    %119 = vector.shape_cast %118 : vector<1x1x32xf32> to vector<1x32xf32>
    %c0_77 = arith.constant 0 : index
    %c0_78 = arith.constant 0 : index
    %c0_79 = arith.constant 0 : index
    %120 = vector.load %arg22[%c0_77, %c0_78, %c0_79] : memref<1x1x32xf32, #tpu.memory_space<vmem>>, vector<1x1x32xf32>
    %121 = vector.shape_cast %120 : vector<1x1x32xf32> to vector<1x32xf32>
    %cst_80 = arith.constant dense<0.000000e+00> : vector<8xf32>
    %122 = vector.multi_reduction <add>, %117, %cst_80 [1] : vector<8x32xf32> to vector<8xf32>
    %123 = vector.shape_cast %122 : vector<8xf32> to vector<8x1xf32>
    %cst_81 = arith.constant 3.200000e+01 : f32
    %124 = vector.broadcast %cst_81 : f32 to vector<8x1xf32>
    %125 = arith.divf %123, %124 : vector<8x1xf32>
    %126 = vector.broadcast %125 : vector<8x1xf32> to vector<8x32xf32>
    %127 = arith.subf %117, %126 : vector<8x32xf32>
    %128 = arith.mulf %127, %127 : vector<8x32xf32>
    %cst_82 = arith.constant dense<0.000000e+00> : vector<8xf32>
    %129 = vector.multi_reduction <add>, %128, %cst_82 [1] : vector<8x32xf32> to vector<8xf32>
    %130 = vector.shape_cast %129 : vector<8xf32> to vector<8x1xf32>
    %cst_83 = arith.constant 3.200000e+01 : f32
    %131 = vector.broadcast %cst_83 : f32 to vector<8x1xf32>
    %132 = arith.divf %130, %131 : vector<8x1xf32>
    %133 = vector.broadcast %125 : vector<8x1xf32> to vector<8x32xf32>
    %134 = arith.subf %117, %133 : vector<8x32xf32>
    %cst_84 = arith.constant 9.99999996E-13 : f32
    %135 = vector.broadcast %cst_84 : f32 to vector<8x1xf32>
    %136 = arith.addf %132, %135 : vector<8x1xf32>
    %137 = math.rsqrt %136 : vector<8x1xf32>
    %138 = vector.broadcast %137 : vector<8x1xf32> to vector<8x32xf32>
    %139 = arith.mulf %134, %138 : vector<8x32xf32>
    %140 = vector.broadcast %119 : vector<1x32xf32> to vector<8x32xf32>
    %141 = arith.mulf %139, %140 : vector<8x32xf32>
    %142 = vector.broadcast %121 : vector<1x32xf32> to vector<8x32xf32>
    %143 = arith.addf %141, %142 : vector<8x32xf32>
    %c0_85 = arith.constant 0 : index
    %c0_86 = arith.constant 0 : index
    %144 = vector.load %arg29[%c0_85, %c0_86] : memref<8x32xf32, #tpu.memory_space<vmem>>, vector<8x32xf32>
    tpu.vector_store %arg29[%c0_85, %c0_86], %143 {strides = array<i32>} : memref<8x32xf32, #tpu.memory_space<vmem>>, vector<8x32xf32>,
    %c1_i32 = arith.constant 1 : i32
    %145 = arith.cmpi eq, %arg1, %c1_i32 : i32
    %146 = arith.extui %145 : i1 to i32
    %c0_i32_87 = arith.constant 0 : i32
    %147 = arith.cmpi ne, %146, %c0_i32_87 : i32
    scf.if %147 {
      %c0_88 = arith.constant 0 : index
      %c0_89 = arith.constant 0 : index
      %c0_90 = arith.constant 0 : index
      %148 = vector.load %arg4[%c0_88, %c0_89, %c0_90] : memref<1x2x8xf32, #tpu.memory_space<vmem>>, vector<1x2x8xf32>
      %149 = vector.shape_cast %148 : vector<1x2x8xf32> to vector<2x8xf32>
      %cst_91 = arith.constant dense<0.000000e+00> : vector<2xf32>
      %150 = vector.multi_reduction <add>, %149, %cst_91 [1] : vector<2x8xf32> to vector<2xf32>
      %151 = vector.shape_cast %150 : vector<2xf32> to vector<2x1xf32>
      %152 = vector.broadcast %151 : vector<2x1xf32> to vector<2x8xf32>
      %153 = arith.divf %149, %152 : vector<2x8xf32>
      %cst_92 = arith.constant dense<0.000000e+00> : vector<2x32xf32>
      %154 = tpu.matmul %153, %143, %cst_92 {dimension_numbers = #tpu.dot_dimension_numbers<[1], [0], [0], [1], [0, 0, 1, 1], [], []>} : vector<2x8xf32>, vector<8x32xf32>, vector<2x32xf32> -> vector<2x32xf32>
      %155 = vector.extract_strided_slice %154 {offsets = [0, 0], sizes = [1, 32], strides = [1, 1]} : vector<2x32xf32> to vector<1x32xf32>
      %156 = arith.truncf %155 : vector<1x32xf32> to vector<1x32xbf16>
      %c0_93 = arith.constant 0 : index
      %c0_94 = arith.constant 0 : index
      %157 = vector.load %arg23[%c0_93, %c0_94] : memref<32x32xbf16, #tpu.memory_space<vmem>>, vector<32x32xbf16>
      %cst_95 = arith.constant dense<0.000000e+00> : vector<1x32xf32>
      %158 = tpu.matmul %156, %157, %cst_95 {dimension_numbers = #tpu.dot_dimension_numbers<[1], [0], [0], [1], [0, 0, 1, 1], [], []>} : vector<1x32xbf16>, vector<32x32xbf16>, vector<1x32xf32> -> vector<1x32xf32>
      %159 = vector.extract_strided_slice %154 {offsets = [1, 0], sizes = [1, 32], strides = [1, 1]} : vector<2x32xf32> to vector<1x32xf32>
      %160 = arith.truncf %159 : vector<1x32xf32> to vector<1x32xbf16>
      %c0_96 = arith.constant 0 : index
      %c0_97 = arith.constant 0 : index
      %161 = vector.load %arg24[%c0_96, %c0_97] : memref<32x32xbf16, #tpu.memory_space<vmem>>, vector<32x32xbf16>
      %cst_98 = arith.constant dense<0.000000e+00> : vector<1x32xf32>
      %162 = tpu.matmul %160, %161, %cst_98 {dimension_numbers = #tpu.dot_dimension_numbers<[1], [0], [0], [1], [0, 0, 1, 1], [], []>} : vector<1x32xbf16>, vector<32x32xbf16>, vector<1x32xf32> -> vector<1x32xf32>
      %163 = arith.addf %158, %162 : vector<1x32xf32>
      %c0_99 = arith.constant 0 : index
      %c0_100 = arith.constant 0 : index
      %164 = vector.load %arg25[%c0_99, %c0_100] : memref<1x32xf32, #tpu.memory_space<vmem>>, vector<1x32xf32>
      %165 = arith.addf %163, %164 : vector<1x32xf32>
      %cst_101 = arith.constant 0.000000e+00 : f32
      %166 = vector.broadcast %cst_101 : f32 to vector<1x32xf32>
      %167 = arith.maximumf %165, %166 : vector<1x32xf32>
      %168 = arith.truncf %167 : vector<1x32xf32> to vector<1x32xbf16>
      %c0_102 = arith.constant 0 : index
      %c0_103 = arith.constant 0 : index
      %169 = vector.load %arg26[%c0_102, %c0_103] : memref<32x128xbf16, #tpu.memory_space<vmem>>, vector<32x128xbf16>
      %cst_104 = arith.constant dense<0.000000e+00> : vector<1x128xf32>
      %170 = tpu.matmul %168, %169, %cst_104 {dimension_numbers = #tpu.dot_dimension_numbers<[1], [0], [0], [1], [0, 0, 1, 1], [], []>} : vector<1x32xbf16>, vector<32x128xbf16>, vector<1x128xf32> -> vector<1x128xf32>
      %c0_105 = arith.constant 0 : index
      %c0_106 = arith.constant 0 : index
      %171 = vector.load %arg27[%c0_105, %c0_106] : memref<1x128xf32, #tpu.memory_space<vmem>>, vector<1x128xf32>
      %172 = arith.addf %170, %171 : vector<1x128xf32>
      %c0_107 = arith.constant 0 : index
      %c0_108 = arith.constant 0 : index
      %c0_109 = arith.constant 0 : index
      %173 = vector.load %arg28[%c0_107, %c0_108, %c0_109] : memref<1x1x128xf32, #tpu.memory_space<vmem>>, vector<1x1x128xf32>
      %174 = vector.shape_cast %173 : vector<1x1x128xf32> to vector<1x128xf32>
      %175 = vector.shape_cast %172 : vector<1x128xf32> to vector<1x1x128xf32>
      tpu.vector_store %arg28[%c0_107, %c0_108, %c0_109], %175 {strides = array<i32>} : memref<1x1x128xf32, #tpu.memory_space<vmem>>, vector<1x1x128xf32>,
    } else {
    }
    return
  }
  func.func @transform_0(%arg0: i32, %arg1: i32) -> (i32, i32, i32) {
    %c0_i32 = arith.constant 0 : i32
    %c0_i32_0 = arith.constant 0 : i32
    %c0_i32_1 = arith.constant 0 : i32
    return %arg0, %c0_i32, %c0_i32_0 : i32, i32, i32
  }
  func.func @transform_1(%arg0: i32, %arg1: i32) -> (i32, i32, i32) {
    %c0_i32 = arith.constant 0 : i32
    %c0_i32_0 = arith.constant 0 : i32
    %c0_i32_1 = arith.constant 0 : i32
    return %arg0, %c0_i32, %c0_i32_0 : i32, i32, i32
  }
  func.func @transform_2(%arg0: i32, %arg1: i32) -> (i32, i32, i32) {
    %c0_i32 = arith.constant 0 : i32
    %c0_i32_0 = arith.constant 0 : i32
    %c0_i32_1 = arith.constant 0 : i32
    return %arg0, %c0_i32, %c0_i32_0 : i32, i32, i32
  }
  func.func @transform_3(%arg0: i32, %arg1: i32) -> (i32, i32) {
    %c0_i32 = arith.constant 0 : i32
    %c0_i32_0 = arith.constant 0 : i32
    %c0_i32_1 = arith.constant 0 : i32
    return %c0_i32, %c0_i32_0 : i32, i32
  }
  func.func @transform_4(%arg0: i32, %arg1: i32) -> (i32, i32) {
    %c0_i32 = arith.constant 0 : i32
    %c0_i32_0 = arith.constant 0 : i32
    %c0_i32_1 = arith.constant 0 : i32
    return %c0_i32, %c0_i32_0 : i32, i32
  }
  func.func @transform_5(%arg0: i32, %arg1: i32) -> (i32, i32, i32, i32) {
    %c0_i32 = arith.constant 0 : i32
    %c0_i32_0 = arith.constant 0 : i32
    %c0_i32_1 = arith.constant 0 : i32
    %c0_i32_2 = arith.constant 0 : i32
    return %arg1, %c0_i32, %c0_i32_0, %c0_i32_1 : i32, i32, i32, i32
  }
  func.func @transform_6(%arg0: i32, %arg1: i32) -> (i32, i32, i32, i32) {
    %c0_i32 = arith.constant 0 : i32
    %c0_i32_0 = arith.constant 0 : i32
    %c0_i32_1 = arith.constant 0 : i32
    %c0_i32_2 = arith.constant 0 : i32
    return %arg1, %c0_i32, %c0_i32_0, %c0_i32_1 : i32, i32, i32, i32
  }
  func.func @transform_7(%arg0: i32, %arg1: i32) -> (i32, i32, i32, i32) {
    %c0_i32 = arith.constant 0 : i32
    %c0_i32_0 = arith.constant 0 : i32
    %c0_i32_1 = arith.constant 0 : i32
    %c0_i32_2 = arith.constant 0 : i32
    return %arg1, %c0_i32, %c0_i32_0, %c0_i32_1 : i32, i32, i32, i32
  }
  func.func @transform_8(%arg0: i32, %arg1: i32) -> (i32, i32, i32, i32) {
    %c0_i32 = arith.constant 0 : i32
    %c0_i32_0 = arith.constant 0 : i32
    %c0_i32_1 = arith.constant 0 : i32
    %c0_i32_2 = arith.constant 0 : i32
    return %arg1, %c0_i32, %c0_i32_0, %c0_i32_1 : i32, i32, i32, i32
  }
  func.func @transform_9(%arg0: i32, %arg1: i32) -> (i32, i32, i32, i32) {
    %c0_i32 = arith.constant 0 : i32
    %c0_i32_0 = arith.constant 0 : i32
    %c0_i32_1 = arith.constant 0 : i32
    %c0_i32_2 = arith.constant 0 : i32
    return %arg1, %c0_i32, %c0_i32_0, %c0_i32_1 : i32, i32, i32, i32
  }
  func.func @transform_10(%arg0: i32, %arg1: i32) -> (i32, i32, i32, i32) {
    %c0_i32 = arith.constant 0 : i32
    %c0_i32_0 = arith.constant 0 : i32
    %c0_i32_1 = arith.constant 0 : i32
    %c0_i32_2 = arith.constant 0 : i32
    return %arg1, %c0_i32, %c0_i32_0, %c0_i32_1 : i32, i32, i32, i32
  }
  func.func @transform_11(%arg0: i32, %arg1: i32) -> (i32, i32, i32, i32) {
    %c0_i32 = arith.constant 0 : i32
    %c0_i32_0 = arith.constant 0 : i32
    %c0_i32_1 = arith.constant 0 : i32
    %c0_i32_2 = arith.constant 0 : i32
    return %arg1, %c0_i32, %c0_i32_0, %c0_i32_1 : i32, i32, i32, i32
  }
  func.func @transform_12(%arg0: i32, %arg1: i32) -> (i32, i32, i32) {
    %c0_i32 = arith.constant 0 : i32
    %c0_i32_0 = arith.constant 0 : i32
    %c0_i32_1 = arith.constant 0 : i32
    return %arg1, %c0_i32, %c0_i32_0 : i32, i32, i32
  }
  func.func @transform_13(%arg0: i32, %arg1: i32) -> (i32, i32, i32) {
    %c0_i32 = arith.constant 0 : i32
    %c0_i32_0 = arith.constant 0 : i32
    %c0_i32_1 = arith.constant 0 : i32
    return %arg1, %c0_i32, %c0_i32_0 : i32, i32, i32
  }
  func.func @transform_14(%arg0: i32, %arg1: i32) -> (i32, i32, i32) {
    %c0_i32 = arith.constant 0 : i32
    %c0_i32_0 = arith.constant 0 : i32
    %c0_i32_1 = arith.constant 0 : i32
    return %arg1, %c0_i32, %c0_i32_0 : i32, i32, i32
  }
  func.func @transform_15(%arg0: i32, %arg1: i32) -> (i32, i32, i32) {
    %c0_i32 = arith.constant 0 : i32
    %c0_i32_0 = arith.constant 0 : i32
    %c0_i32_1 = arith.constant 0 : i32
    return %arg1, %c0_i32, %c0_i32_0 : i32, i32, i32
  }
  func.func @transform_16(%arg0: i32, %arg1: i32) -> (i32, i32, i32) {
    %c0_i32 = arith.constant 0 : i32
    %c0_i32_0 = arith.constant 0 : i32
    %c0_i32_1 = arith.constant 0 : i32
    return %arg1, %c0_i32, %c0_i32_0 : i32, i32, i32
  }
  func.func @transform_17(%arg0: i32, %arg1: i32) -> (i32, i32, i32) {
    %c0_i32 = arith.constant 0 : i32
    %c0_i32_0 = arith.constant 0 : i32
    %c0_i32_1 = arith.constant 0 : i32
    return %arg1, %c0_i32, %c0_i32_0 : i32, i32, i32
  }
  func.func @transform_18(%arg0: i32, %arg1: i32) -> (i32, i32, i32) {
    %c0_i32 = arith.constant 0 : i32
    %c0_i32_0 = arith.constant 0 : i32
    %c0_i32_1 = arith.constant 0 : i32
    return %arg1, %c0_i32, %c0_i32_0 : i32, i32, i32
  }
  func.func @transform_19(%arg0: i32, %arg1: i32) -> (i32, i32, i32) {
    %c0_i32 = arith.constant 0 : i32
    %c0_i32_0 = arith.constant 0 : i32
    %c0_i32_1 = arith.constant 0 : i32
    return %arg1, %c0_i32, %c0_i32_0 : i32, i32, i32
  }
  func.func @transform_20(%arg0: i32, %arg1: i32) -> (i32, i32, i32) {
    %c0_i32 = arith.constant 0 : i32
    %c0_i32_0 = arith.constant 0 : i32
    %c0_i32_1 = arith.constant 0 : i32
    return %arg1, %c0_i32, %c0_i32_0 : i32, i32, i32
  }
  func.func @transform_21(%arg0: i32, %arg1: i32) -> (i32, i32) {
    %c0_i32 = arith.constant 0 : i32
    %c0_i32_0 = arith.constant 0 : i32
    %c0_i32_1 = arith.constant 0 : i32
    return %c0_i32, %c0_i32_0 : i32, i32
  }
  func.func @transform_22(%arg0: i32, %arg1: i32) -> (i32, i32) {
    %c0_i32 = arith.constant 0 : i32
    %c0_i32_0 = arith.constant 0 : i32
    %c0_i32_1 = arith.constant 0 : i32
    return %c0_i32, %c0_i32_0 : i32, i32
  }
  func.func @transform_23(%arg0: i32, %arg1: i32) -> (i32, i32) {
    %c0_i32 = arith.constant 0 : i32
    %c0_i32_0 = arith.constant 0 : i32
    %c0_i32_1 = arith.constant 0 : i32
    return %c0_i32, %c0_i32_0 : i32, i32
  }
  func.func @transform_24(%arg0: i32, %arg1: i32) -> (i32, i32) {
    %c0_i32 = arith.constant 0 : i32
    %c0_i32_0 = arith.constant 0 : i32
    %c0_i32_1 = arith.constant 0 : i32
    return %c0_i32, %c0_i32_0 : i32, i32
  }
  func.func @transform_25(%arg0: i32, %arg1: i32) -> (i32, i32) {
    %c0_i32 = arith.constant 0 : i32
    %c0_i32_0 = arith.constant 0 : i32
    %c0_i32_1 = arith.constant 0 : i32
    return %c0_i32, %c0_i32_0 : i32, i32
  }
  func.func @transform_26(%arg0: i32, %arg1: i32) -> (i32, i32, i32) {
    %c0_i32 = arith.constant 0 : i32
    %c0_i32_0 = arith.constant 0 : i32
    %c0_i32_1 = arith.constant 0 : i32
    return %arg0, %c0_i32, %c0_i32_0 : i32, i32, i32
  }
}

</mosaic_0001>

<bundles_post_ra>
// kernel: bert_classifier_forward.1
= control target key start
LH: loop header
LB: loop body
LE: loop exit
PB: predicated region body
PF: predicated region fallthrough
CT: control target
= control target key end

     0   :  { %s3667_s0 = inlined_call_operand.vmem [shape: f32[2,8,32], index: 0, kind: input, shape index: {}]   ;;  %s3668_s1 = inlined_call_operand.vmem [shape: f32[2,1,8], index: 1, kind: input, shape index: {}]   ;;  %s3669_s2 = inlined_call_operand.vmem [shape: f32[2,2,8], index: 2, kind: input, shape index: {}]   ;;  %s3670_s3 = inlined_call_operand.vmem [shape: f32[1,32], index: 3, kind: input, shape index: {}]   ;;  %s3671_s4 = inlined_call_operand.vmem [shape: f32[1,32], index: 4, kind: input, shape index: {}]   ;;  %s3672_s5 = inlined_call_operand.vmem [shape: bf16[2,2,32,16], index: 5, kind: input, shape index: {}]   ;;  %s3673_s6 = inlined_call_operand.vmem [shape: bf16[2,2,32,16], index: 6, kind: input, shape index: {}]   ;;  %s3674_s7 = inlined_call_operand.vmem [shape: bf16[2,2,32,16], index: 7, kind: input, shape index: {}]   ;;  %s3675_s8 = inlined_call_operand.vmem [shape: f32[2,2,1,16], index: 8, kind: input, shape index: {}]   ;;  %s3676_s9 = inlined_call_operand.vmem [shape: f32[2,2,1,16], index: 9, kind: input, shape index: {}]   ;;  %s3677_s10 = inlined_call_operand.vmem [shape: f32[2,2,1,16], index: 10, kind: input, shape index: {}]   ;;  %s3678_s11 = inlined_call_operand.vmem [shape: bf16[2,2,16,32], index: 11, kind: input, shape index: {}]   ;;  %s3679_s12 = inlined_call_operand.vmem [shape: f32[2,1,32], index: 12, kind: input, shape index: {}]   ;;  %s3680_s13 = inlined_call_operand.vmem [shape: f32[2,1,32], index: 13, kind: input, shape index: {}]   ;;  %s3681_s14 = inlined_call_operand.vmem [shape: f32[2,1,32], index: 14, kind: input, shape index: {}]   ;;  %s3682_s15 = inlined_call_operand.vmem [shape: bf16[2,32,64], index: 15, kind: input, shape index: {}]   ;;  %s3683_s16 = inlined_call_operand.vmem [shape: f32[2,1,64], index: 16, kind: input, shape index: {}]   ;;  %s3684_s17 = inlined_call_operand.vmem [shape: bf16[2,64,32], index: 17, kind: input, shape index: {}]   ;;  %s3685_s18 = inlined_call_operand.vmem [shape: f32[2,1,32], index: 18, kind: input, shape index: {}]   ;;  %s3686_s19 = inlined_call_operand.vmem [shape: f32[2,1,32], index: 19, kind: input, shape index: {}]   ;;  %s3687_s20 = inlined_call_operand.vmem [shape: f32[2,1,32], index: 20, kind: input, shape index: {}]   ;;  %s3688_s21 = inlined_call_operand.vmem [shape: bf16[32,32], index: 21, kind: input, shape index: {}]   ;;  %s3689_s22 = inlined_call_operand.vmem [shape: bf16[32,32], index: 22, kind: input, shape index: {}]   ;;  %s3690_s23 = inlined_call_operand.vmem [shape: f32[1,32], index: 23, kind: input, shape index: {}]   ;;  %s3691_s24 = inlined_call_operand.vmem [shape: bf16[32,128], index: 24, kind: input, shape index: {}]   ;;  %s3692_s25 = inlined_call_operand.vmem [shape: f32[1,128], index: 25, kind: input, shape index: {}]   ;;  %s3693_s26 = inlined_call_operand.hbm [shape: f32[2,1,128], index: 26, kind: output, shape index: {}]  }
   0x1   :  { %3716 = sst [smem:[#allocation25_spill]] %s3667_s0 }
   0x2   :  { %3717 = sst [smem:[#allocation26_spill]] %s3668_s1 }
   0x3   :  { %3718 = sst [smem:[#allocation27_spill]] %s3669_s2 }
   0x4   :  { %3719 = sst [smem:[#allocation28_spill]] %s3670_s3 }
   0x5   :  { %3720 = sst [smem:[#allocation29_spill]] %s3671_s4 }
   0x6   :  { %3721 = sst [smem:[#allocation30_spill]] %s3672_s5 }
   0x7   :  { %3722 = sst [smem:[#allocation31_spill]] %s3673_s6 }
   0x8   :  { %3723 = sst [smem:[#allocation32_spill]] %s3674_s7 }
   0x9   :  { %3724 = sst [smem:[#allocation33_spill]] %s3675_s8 }
   0xa   :  { %3725 = sst [smem:[#allocation34_spill]] %s3676_s9 }
   0xb   :  { %3726 = sst [smem:[#allocation35_spill]] %s3677_s10 }
   0xc   :  { %3727 = sst [smem:[#allocation36_spill]] %s3678_s11 }
   0xd   :  { %3728 = sst [smem:[#allocation37_spill]] %s3682_s15 }
   0xe   :  { %3729 = sst [smem:[#allocation38_spill]] %s3687_s20 }
   0xf   :  { %3730 = sst [smem:[#allocation39_spill]] %s3688_s21 }
  0x10   :  { %3731 = sst [smem:[#allocation40_spill]] %s3689_s22 }
  0x11   :  { %3732 = sst [smem:[#allocation41_spill]] %s3690_s23 }
  0x12   :  { %3733 = sst [smem:[#allocation42_spill]] %s3691_s24 }
  0x13   :  { %3734 = sst [smem:[#allocation43_spill]] %s3692_s25 }
  0x14   :  { %3735 = sst [smem:[#allocation44_spill]] %s3693_s26 }
  0x15   :  { %31 = vsyncpa [#allocation4], 0 }
  0x16   :  { %33 = vsyncpa [#allocation4 + $0x1], 0  ;;  %s3254_s27 = smov 0   ;;  %s3256_s3 = smov 0  }
  0x17   :  { %s3258_s7 = smov 0   ;;  %s3260_s28 = smov 0  }
  0x18   :  { %s3262_s8 = smov 0   ;;  %s3264_s4 = smov 0  }
  0x19   :  { %s3266_s29 = smov 0   ;;  %s3268_s0 = smov 0  }
  0x1a LB: > { %3736 = sst [smem:[#allocation6_spill]] %s3084_s27  ;;  %s2626_s9 = sadd.s32 4294967295, %s3112_s0   ;;  %s3112_s0 = sphi %s3268_s0, %s39_s0   ;;  %s3108_s29 = sphi %s3266_s29, %s3808_s29   ;;  %s3104_s4 = sphi %s3264_s4, %s3804_s4   ;;  %s3100_s8 = sphi %s3262_s8, %s3803_s8   ;;  %s3096_s28 = sphi %s3260_s28, %s3802_s28   ;;  %s3092_s7 = sphi %s3258_s7, %s3801_s7   ;;  %s3088_s3 = sphi %s3256_s3, %s3807_s3   ;;  %s3084_s27 = sphi %s3254_s27, %s3806_s27  }
  0x1b   : > { %3737 = sst [smem:[#allocation7_spill]] %s3092_s7  ;;  %s2627_s30 = sadd.s32 4294967294, %s3112_s0  }
  0x1c   : > { %3738 = sst [smem:[#allocation8_spill]] %s3096_s28  ;;  %s48_s2 = sadd.s32 1, %s3104_s4 }
  0x1d   : > { %3739 = sst [smem:[#allocation9_spill]] %s3100_s8  ;;  %p49_p0 = scmp.ge.s32.totalorder %s48_s2, 2 }
  0x1e   : > { %3740 = sst [smem:[#allocation10_spill]] %s3104_s4  ;;  %s51_s5 = sadd.s32 1, %s3108_s29 }
  0x1f   : > { %3741 = sst [smem:[#allocation11_spill]] %s3108_s29  ;;  %p709_p1 = scmp.ne.s32.totalorder %s3092_s7, %s3088_s3 }
  0x20   : > { %3742 = sst [smem:[#allocation12_spill]] %s3112_s0  ;;  %p710_p2 = scmp.eq.s32.totalorder %s2626_s9, 3 }
  0x21   : > { %s3810_s2 = smov (%p49_p0, %s48_s2), 0  ;;  %s3812_s5 = smov (!%p49_p0, %s51_s5), %s3108_s29 }
  0x22   : > { %3743 = sst [smem:[#allocation13_spill]] %s3810_s2  ;;  %p3303_p3 = por %p710_p2, %p709_p1 }
  0x23   : > { %p715_p4 = scmp.ne.s32.totalorder %s3088_s3, %s3084_s27  ;;  %p53_p5 = scmp.ge.s32.totalorder %s3812_s5, 2 }
  0x24   : > { %s3744_s10 = scalar_select %p3303_p3, 1, 0 }
  0x25   : > { %p716_p6 = scmp.eq.s32.totalorder %s2627_s30, 3  ;;  %p2630_p7 = scmp.ge.s32.totalorder %s3112_s0, 1 }
  0x26   : > { %3745 = sst [smem:[#allocation14_spill]] %s3744_s10  ;;  %p886_p8 = scmp.lt.s32.totalorder %s3112_s0, 5 }
  0x27   : > { %s3814_s5 = smov (%p53_p5, %s3812_s5), 0  ;;  %p3313_p9 = por %p716_p6, %p715_p4 }
  0x28   : > { %3746 = sst [smem:[#allocation15_spill]] %s3814_s5  ;;  %p887_p10 = pnand %p2630_p7, %p886_p8 }
  0x29   : > { %s3747_s6 = scalar_select %p3313_p9, 1, 0 }
  0x2a   : > { %s696_s1 = ssub.s32 %s3108_s29, %s3814_s5  ;;  %s699_s9 = sadd.s32 1, %s3092_s7 }
  0x2b   : > { %3748 = sst [smem:[#allocation16_spill]] %s3747_s6  ;;  %p697_p11 = scmp.eq.s32.totalorder %s696_s1, 0 }
  0x2c   : > { %890 = sbr.rel (%p887_p10) target bundleno = 3351 (0xd17), region = 124 }
  0x2d   : > { %s3321_s2 = scalar_select %p697_p11, %s3092_s7, %s699_s9  }
  0x2f   : > { %3749 = sst [smem:[#allocation17_spill]] %s3321_s2 }
  0x31   : > { %p1024_p12 = scmp.lt.s32.totalorder %s3100_s8, 1  ;;  %p1035_p13 = scmp.lt.s32.totalorder %s3096_s28, 1 }
  0x32   : > { %s3752_s27 = sld [smem:[#allocation25_spill]] }
  0x33   : > { %s3327_s4 = scalar_select %p1024_p12, %s3100_s8, 1 }
  0x34   : > { %s3330_s6 = scalar_select %p1035_p13, %s3096_s28, 1 }
  0x35   : > { %3750 = sst [smem:[#allocation18_spill]] %s3327_s4  ;;  %s2631_s1 = sshll.u32 %s3327_s4, 3 }
  0x36   : > { %s2632_s26 = sshll.u32 %s3327_s4, 1  ;;  %s3753_s25 = sld [smem:[#allocation27_spill]] }
  0x37   : > { %s2713_s24 = sshll.u32 %s3330_s6, 5  ;;  %s3755_s28 = sld [smem:[#allocation30_spill]] }
  0x38   : > { %s1027_s0 = scalar_lea.vmem %s3752_s27, %s2631_s1  ;;  %s3757_s2 = sld [smem:[#allocation31_spill]] }
  0x39   : > { %s3759_s1 = sld [smem:[#allocation32_spill]]  ;;  %s2716_s27 = sshll.u32 %s3330_s6, 4 }
  0x3a   : > { %s3761_s21 = sld [smem:[#allocation33_spill]] }
  0x3b   : > { %s3763_s4 = sld [smem:[#allocation34_spill]] }
  0x3c   : > { %s3344_s23 = scalar_lea.vmem %s3753_s25, %s2632_s26  ;;  %s2639_s25 = sshll.u32 %s3330_s6, 1 }
  0x3d   : > { %3754 = sst [smem:[#allocation19_spill]] %s3344_s23  ;;  %s3350_s5 = scalar_lea.vmem %s3755_s28, %s2713_s24 }
  0x3e   : > { %3756 = sst [smem:[#allocation20_spill]] %s3350_s5  ;;  %s3355_s7 = scalar_lea.vmem %s3757_s2, %s2713_s24 }
  0x3f   : > { %3758 = sst [smem:[#allocation21_spill]] %s3355_s7  ;;  %s3360_s8 = scalar_lea.vmem %s3759_s1, %s2713_s24 }
  0x40   : > { %3760 = sst [smem:[#allocation22_spill]] %s3360_s8  ;;  %s3366_s22 = scalar_lea.vmem %s3761_s21, %s2639_s25 }
  0x41   : > { %3762 = sst [smem:[#allocation23_spill]] %s3366_s22  ;;  %s3371_s29 = scalar_lea.vmem %s3763_s4, %s2639_s25 }
  0x42   : > { %s3764_s7 = sld [smem:[#allocation35_spill]]  ;;  %s3408_s26 = scalar_lea.vmem %s3684_s17, %s2713_s24 }
  0x43   : > { %s3765_s11 = sld [smem:[#allocation36_spill]]  ;;  %s1091_s23 = scalar_lea.vmem %s3685_s18, %s3330_s6 }
  0x44   : > { %s3767_s15 = sld [smem:[#allocation37_spill]]  ;;  %s1094_s2 = scalar_lea.vmem %s3686_s19, %s3330_s6 }
  0x45   : > { %s3770_s1 = sld [smem:[#allocation8_spill]] }
  0x48   : > { %s3376_s5 = scalar_lea.vmem %s3764_s7, %s2639_s25  ;;  %s3768_s25 = sld [smem:[#allocation38_spill]] }
  0x49   : > { %s3382_s8 = scalar_lea.vmem %s3765_s11, %s2716_s27  ;;  %s1083_s11 = scalar_lea.vmem %s3683_s16, %s3330_s6 }
  0x4a   : > { %3766 = sst [smem:[#allocation24_spill]] %s3382_s8  ;;  %s3399_s9 = scalar_lea.vmem %s3767_s15, %s2716_s27 }
  0x4b   : > { %s3769_s15 = sand.u32 1, %s3088_s3   ;;  %p2648_p0 = scmp.ne.s32.totalorder %s3770_s1, 0 }
  0x4c   : > { %s3424_s30 = scalar_lea.vmem [#allocation3], %s3769_s15  ;;  %s3771_s8 = sld [smem:[#allocation28_spill]] (!%p2648_p0) }
  0x4d   : > { %1102 = sbr.rel (%p2648_p0) target bundleno = 392 (0x188), region = 128  ;;  %s3772_s22 = sld [smem:[#allocation29_spill]] (!%p2648_p0) }
  0x4e   : > { %s1097_s10 = scalar_lea.vmem %s3768_s25, %s3330_s6 }
  0x52   : > { %v1103_v0 = vld [vmem:[%s1027_s0] sm:$0xff]  ;;  %vm1106_vm0 = vcmask 261120  }
  0x53   : > { %v1107_v1 = vsel %vm1106_vm0, %v1103_v0, 0.0  ;;  %v2649_v11 = vld [vmem:[%s3771_s8] ss:$0 sm:$0xff] }
  0x54   : > { %1108 = vadd.xlane.f32.xlu0 %v1107_v1  ;;  %v2650_v13 = vld [vmem:[%s3772_s22] ss:$0 sm:$0xff] }
  0xdd   : > { %v1109_v2 = vpop.xlane.xlu0 %1108 }
  0xde   : > { %v1111_v3 = vmul.f32 0.03125, %v1109_v2 }
  0xe0   : > { %v1112_v4 = vsub.f32 %v1103_v0, %v1111_v3 }
  0xe2   : > { %v1113_v5 = vmul.f32 %v1112_v4, %v1112_v4 }
  0xe4   : > { %v1114_v6 = vsel %vm1106_vm0, %v1113_v5, 0.0 }
  0xe5   : > { %1115 = vadd.xlane.f32.xlu0 %v1114_v6 }
 0x16e   : > { %v1116_v7 = vpop.xlane.xlu0 %1115 }
 0x16f   : > { %v1117_v8 = vmul.f32 0.03125, %v1116_v7 }
 0x171   : > { %v1118_v9 = vadd.f32 1e-12, %v1117_v8 }
 0x173   : > { %2976 = vrsqrt.f32 %v1118_v9 }
 0x180   : > { %v2977_v10 = vpop.eup %2976 }
 0x181   : > { %v1120_v12 = vmul.f32 %v2977_v10, %v1112_v4 }
 0x183   : > { %v1127_v14 = vmul.f32 %v2649_v11, %v1120_v12 }
 0x185   : > { %v1134_v15 = vadd.f32 %v2650_v13, %v1127_v14 }
 0x187   : > { %1135 = vst.msk [vmem:[#allocation2] sm:$0xff] %vm1106_vm0, %v1134_v15 }
 0x188 PF: > { %s3773_s21 = sld [smem:[#allocation20_spill]]  ;;  %v3114_v17 = vmov 0.0   ;;  %vm3115_vm1 = vmmov 0   ;;  %vm1172_vm2 = vcmask 261120   ;;  %v2659_v38 = vld [vmem:[%s3371_s29] ss:$0 sm:$0xff]  ;;  %s3781_s0 = scalar_lea.vmem %s3679_s12, %s3330_s6 }
 0x189   : > { %2768 = vmatprep.subr.bf16.mxu0 %v3114_v17  ;;  %s3774_s4 = sld [smem:[#allocation21_spill]]  ;;  %2776 = vmatprep.subr.bf16.mxu1 %v3114_v17  ;;  %v2660_v40 = vld [vmem:[%s3371_s29 + $0x1] ss:$0 sm:$0xff]  ;;  %vm1524_vm3 = vcmask 130048   ;;  %v2667_v61 = vld [vmem:[%s3376_s5] ss:$0 sm:$0xff] }
 0x18a   : > { %2772 = vmatprep.mubr.msk.bf16.mxu0 %vm3115_vm1, %v3114_v17  ;;  %2780 = vmatprep.mubr.msk.bf16.mxu1 %vm3115_vm1, %v3114_v17  ;;  %s3775_s28 = sld [smem:[#allocation22_spill]]  ;;  %vm1658_vm4 = vcmask 1043456   ;;  %v2668_v1 = vld [vmem:[%s3376_s5 + $0x1] ss:$0 sm:$0xff]  ;;  %vm1628_vm5 = vcmask 64512   ;;  %vm2010_vm6 = vcmask 523264  }
 0x18b   : > { %s3776_s7 = sld [smem:[#allocation23_spill]] }
 0x18c   : > { %s3777_s29 = sld [smem:[#allocation18_spill]] }
 0x18d   : > { %s3778_s25 = sld [smem:[#allocation26_spill]] }
 0x18e   : > { %v2978_v16 = vld [vmem:[%s3773_s21 + $0x8] sm:$0xff]   ;;  %v2979_v18 = vld [vmem:[%s3773_s21 + $0x18] sm:$0xff]   ;;  %v2980_v19 = vld [vmem:[%s3773_s21] sm:$0xff]   ;;  %s3780_s15 = sld [smem:[#allocation24_spill]] }
 0x18f   : > { %2769 = vmatpush3.bf16.msra.mxu0 %v2978_v16  ;;  %2777 = vmatpush3.bf16.msra.mxu1 %v2979_v18  ;;  %v2981_v20 = vld [vmem:[%s3773_s21 + $0x10] sm:$0xff]   ;;  %v3448_v21 = vld [vmem:[#allocation2] sm:$0xff]  ;;  %v2982_v23 = vld [vmem:[%s3774_s4 + $0x8] sm:$0xff]   ;;  %s3782_s21 = scalar_lea.vmem %s3680_s13, %s3330_s6 }
 0x190   : > { %2770 = vmatprep.subr.bf16.mxu0 %v3114_v17  ;;  %2778 = vmatprep.subr.bf16.mxu1 %v3114_v17  ;;  %v1137_v22 = vpack.c.bf16 %v3448_v21, %v3448_v21  ;;  %v2983_v24 = vld [vmem:[%s3774_s4 + $0x18] sm:$0xff]   ;;  %v2984_v25 = vld [vmem:[%s3774_s4] sm:$0xff]   ;;  %v2985_v26 = vld [vmem:[%s3774_s4 + $0x10] sm:$0xff]  }
 0x191   : > { %v2986_v27 = vld [vmem:[%s3775_s28 + $0x8] sm:$0xff]   ;;  %v2987_v28 = vld [vmem:[%s3775_s28] sm:$0xff]   ;;  %v2988_v29 = vld [vmem:[%s3775_s28 + $0x18] sm:$0xff]  }
 0x192   : > { %v2989_v30 = vld [vmem:[%s3775_s28 + $0x10] sm:$0xff]   ;;  %v2651_v48 = vld [vmem:[%s3776_s7] ss:$0 sm:$0xff]  ;;  %v2652_v51 = vld [vmem:[%s3776_s7 + $0x1] ss:$0 sm:$0xff] }
 0x193   : > { %2771 = vmatpush3.bf16.msra.mxu0 %v2980_v19  ;;  %2779 = vmatpush3.bf16.msra.mxu1 %v2981_v20  ;;  %s3779_s1 = scalar_lea.vmem %s3778_s25, %s3777_s29 }
 0x194   : > { %2784 = vmatprep.subr.bf16.mxu0 %v3114_v17  ;;  %2792 = vmatprep.subr.bf16.mxu1 %v3114_v17  ;;  %v2677_v14 = vld [vmem:[%s3779_s1] ss:$0 sm:$0xff] }
 0x196   : > { %2773 = vmatmul.mubr.msk.bf16.vlgmr.msra.gmra.mxu0 %vm1172_vm2, %v1137_v22  ;;  %2781 = vmatmul.mubr.msk.bf16.vlgmr.msra.gmra.mxu1 %vm1172_vm2, %v1137_v22 }
 0x197   : > { %2785 = vmatpush3.bf16.msra.mxu0 %v2982_v23  ;;  %2793 = vmatpush3.bf16.msra.mxu1 %v2983_v24 }
 0x198   : > { %2786 = vmatprep.subr.bf16.mxu0 %v3114_v17  ;;  %2794 = vmatprep.subr.bf16.mxu1 %v3114_v17 }
 0x199   : > { %2788 = vmatprep.mubr.msk.bf16.mxu0 %vm3115_vm1, %v3114_v17  ;;  %2796 = vmatprep.mubr.msk.bf16.mxu1 %vm3115_vm1, %v3114_v17 }
 0x19b   : > { %2787 = vmatpush3.bf16.msra.mxu0 %v2984_v25  ;;  %2795 = vmatpush3.bf16.msra.mxu1 %v2985_v26 }
 0x19c   : > { %2800 = vmatprep.subr.bf16.mxu0 %v3114_v17  ;;  %2808 = vmatprep.subr.bf16.mxu1 %v3114_v17 }
 0x19e   : > { %2789 = vmatmul.mubr.msk.bf16.vlgmr.msra.gmra.mxu0 %vm1172_vm2, %v1137_v22  ;;  %2797 = vmatmul.mubr.msk.bf16.vlgmr.msra.gmra.mxu1 %vm1172_vm2, %v1137_v22 }
 0x19f   : > { %2804 = vmatprep.mubr.msk.bf16.mxu0 %vm3115_vm1, %v3114_v17  ;;  %2812 = vmatprep.mubr.msk.bf16.mxu1 %vm3115_vm1, %v3114_v17 }
 0x1a0   : > { %2801 = vmatpush3.bf16.msra.mxu0 %v2986_v27  ;;  %2809 = vmatpush3.bf16.msra.mxu1 %v2988_v29 }
 0x1a1   : > { %2802 = vmatprep.subr.bf16.mxu0 %v3114_v17  ;;  %2810 = vmatprep.subr.bf16.mxu1 %v3114_v17 }
 0x1a4   : > { %2803 = vmatpush3.bf16.msra.mxu0 %v2987_v28  ;;  %2811 = vmatpush3.bf16.msra.mxu1 %v2989_v30 }
 0x1a5   : > { %2816 = vmatprep.subr.bf16.mxu0 %v3114_v17  ;;  %2822 = vmatprep.subr.bf16.mxu1 %v3114_v17 }
 0x1a7   : > { %2805 = vmatmul.mubr.msk.bf16.vlgmr.msra.gmra.mxu0 %vm1172_vm2, %v1137_v22  ;;  %2813 = vmatmul.mubr.msk.bf16.vlgmr.msra.gmra.mxu1 %vm1172_vm2, %v1137_v22 }
 0x1a8   : > { %2818 = vmatprep.mubr.msk.bf16.mxu0 %vm3115_vm1, %v3114_v17  ;;  %2824 = vmatprep.mubr.msk.bf16.mxu1 %vm3115_vm1, %v3114_v17 }
 0x256   : > { %v1210_v31 = vpop.f32.mrf.mxu0  ;;  %v1262_v32 = vpop.f32.mrf.mxu1 }
 0x257   : > { %v1211_v56 = vadd.f32 %v2651_v48, %v1210_v31  ;;  %v1263_v58 = vadd.f32 %v2652_v51, %v1262_v32  ;;  %v2990_v48 = vld [vmem:[%s3780_s15] sm:$0xff]  }
 0x258   : > { %v2774_v33 = vpop.f32.mrf.mxu0  ;;  %v2782_v34 = vpop.f32.mrf.mxu1 }
 0x259   : > { %v1520_v59 = vpack.c.bf16 %v1211_v56, %v1211_v56  ;;  %v1521_v60 = vpack.c.bf16 %v1263_v58, %v1263_v58 }
 0x25a   : > { %v1213_v35 = vpop.f32.mrf.mxu0  ;;  %v1265_v36 = vpop.f32.mrf.mxu1 }
 0x25c   : > { %v2775_v37 = vpop.f32.mrf.mxu0  ;;  %v2783_v39 = vpop.f32.mrf.mxu1 }
 0x25e   : > { %v1336_v41 = vpop.f32.mrf.mxu0  ;;  %v1388_v43 = vpop.f32.mrf.mxu1 }
 0x25f   : > { %v1337_v42 = vadd.f32 %v2659_v38, %v1336_v41  ;;  %v1389_v44 = vadd.f32 %v2660_v40, %v1388_v43 }
 0x260   : > { %v2790_v45 = vpop.f32.mrf.mxu0  ;;  %v2798_v47 = vpop.f32.mrf.mxu1 }
 0x261   : > { %v1522_v46 = vpack.c.bf16 %v1337_v42, %v1337_v42  ;;  %v1523_v49 = vpack.c.bf16 %v1389_v44, %v1389_v44 }
 0x262   : > { %v1339_v50 = vpop.f32.mrf.mxu0  ;;  %v1391_v53 = vpop.f32.mrf.mxu1 }
 0x263   : > { %v1529_v52 = vsel %vm1524_vm3, %v1522_v46, 0  ;;  %v1575_v54 = vsel %vm1524_vm3, %v1523_v49, 0  ;;  %v2991_v49 = vld [vmem:[%s3780_s15 + $0x8] sm:$0xff]   ;;  %s3785_s15 = sld [smem:[#allocation8_spill]] }
 0x264   : > { %v2791_v55 = vpop.f32.mrf.mxu0  ;;  %2817 = vmatpush3.bf16.xpose.msra.mxu0 %v1529_v52  ;;  %v2799_v57 = vpop.f32.mrf.mxu1  ;;  %2823 = vmatpush3.bf16.xpose.msra.mxu1 %v1575_v54 }
 0x265   : > { %2828 = vmatprep.subr.bf16.mxu0 %v3114_v17  ;;  %2834 = vmatprep.subr.bf16.mxu1 %v3114_v17 }
 0x267   : > { %v1462_v62 = vpop.f32.mrf.mxu0  ;;  %v1514_v4 = vpop.f32.mrf.mxu1 }
 0x268   : > { %v1463_v63 = vadd.f32 %v2667_v61, %v1462_v62  ;;  %v1515_v6 = vadd.f32 %v2668_v1, %v1514_v4 }
 0x269   : > { %v2806_v0 = vpop.f32.mrf.mxu0  ;;  %v2814_v8 = vpop.f32.mrf.mxu1  ;;  %p2699_p1 = scmp.ne.s32.totalorder %s3785_s15, 1 }
 0x26a   : > { %v1653_v2 = vpack.c.bf16 %v1463_v63, %v1463_v63  ;;  %v1654_v9 = vpack.c.bf16 %v1515_v6, %v1515_v6  ;;  %s3786_s24 = sld [smem:[#allocation19_spill]] (!%p2699_p1) }
 0x26b   : > { %2819 = vmatmul.mubr.msk.bf16.vlgmr.msra.gmra.mxu0 %vm1524_vm3, %v1520_v59  ;;  %2825 = vmatmul.mubr.msk.bf16.vlgmr.msra.gmra.mxu1 %vm1524_vm3, %v1521_v60  ;;  %v1465_v3 = vpop.f32.mrf.mxu0  ;;  %v1517_v10 = vpop.f32.mrf.mxu1  ;;  %s3788_s20 = sld [smem:[#allocation39_spill]] (!%p2699_p1) }
 0x26c   : > { %2830 = vmatprep.mubr.msk.bf16.mxu0 %vm3115_vm1, %v3114_v17  ;;  %2836 = vmatprep.mubr.msk.bf16.mxu1 %vm3115_vm1, %v3114_v17  ;;  %v1660_v5 = vsel %vm1658_vm4, %v1653_v2, 0  ;;  %v1706_v11 = vsel %vm1658_vm4, %v1654_v9, 0  ;;  %v2684_v2 = vld [vmem:[%s3781_s0] ss:$0 sm:$0xff]  ;;  %s3789_s29 = sld [smem:[#allocation42_spill]] (!%p2699_p1) }
 0x26d   : > { %v2807_v7 = vpop.f32.mrf.mxu0  ;;  %2829 = vmatpush3.bf16.msra.mxu0 %v1660_v5  ;;  %v2815_v12 = vpop.f32.mrf.mxu1  ;;  %2835 = vmatpush3.bf16.msra.mxu1 %v1706_v11  ;;  %s3791_s25 = sld [smem:[#allocation41_spill]] (!%p2699_p1) }
 0x26e   : > { %2840 = vmatprep.subr.bf16.mxu0 %v3114_v17  ;;  %2846 = vmatprep.subr.bf16.mxu1 %v3114_v17 }
 0x32b   : > { %v1565_v13 = vpop.f32.mrf.mxu0  ;;  %v1611_v16 = vpop.f32.mrf.mxu1 }
 0x32c   : > { %v1617_v15 = vmul.f32 0.25, %v1565_v13  ;;  %v1618_v18 = vmul.f32 0.25, %v1611_v16  ;;  %v2992_v16 = vld [vmem:[%s3399_s9 + $0x8] sm:$0xff]  }
 0x32d   : > { %v2820_v19 = vpop.f32.mrf.mxu0  ;;  %v2826_v20 = vpop.f32.mrf.mxu1 }
 0x32e   : > { %v1626_v22 = vadd.f32 %v2677_v14, %v1617_v15  ;;  %v1627_v26 = vadd.f32 %v2677_v14, %v1618_v18  ;;  %v2993_v18 = vld [vmem:[%s3399_s9] sm:$0xff]   ;;  %s3783_s9 = scalar_lea.vmem %s3681_s14, %s3330_s6 }
 0x32f   : > { %v1568_v23 = vpop.f32.mrf.mxu0  ;;  %v1614_v24 = vpop.f32.mrf.mxu1 }
 0x330   : > { %v1629_v25 = vsel %vm1628_vm5, %v1626_v22, -inf  ;;  %v1632_v29 = vsel %vm1628_vm5, %v1627_v26, -inf  ;;  %v2685_v23 = vld [vmem:[%s3782_s21] ss:$0 sm:$0xff] }
 0x331   : > { %1630 = vmax.xlane.f32.xlu0 %v1629_v25  ;;  %v2821_v27 = vpop.f32.mrf.mxu0  ;;  %v2827_v28 = vpop.f32.mrf.mxu1  ;;  %v2686_v25 = vld [vmem:[%s3783_s9] ss:$0 sm:$0xff] }
 0x335   : > { %1633 = vmax.xlane.f32.xlu0 %v1632_v29  ;;  %v2994_v29 = vld [vmem:[%s3408_s26 + $0x18] sm:$0xff]  }
 0x3ba   : > { %v1631_v30 = vpop.xlane.xlu0 %1630 }
 0x3bb   : > { %v1635_v31 = vsub.f32 %v1626_v22, %v1631_v30  ;;  %v2995_v30 = vld [vmem:[%s3408_s26 + $0x10] sm:$0xff]  }
 0x3bd   : > { %v1637_v32 = vmul.f32 1.442695, %v1635_v31  ;;  %v2996_v31 = vld [vmem:[%s3408_s26 + $0x8] sm:$0xff]  }
 0x3be   : > { %v1634_v33 = vpop.xlane.xlu0 %1633 }
 0x3bf   : > { %2998 = vpow2.f32 %v1637_v32  ;;  %v1636_v34 = vsub.f32 %v1627_v26, %v1634_v33  ;;  %v2997_v32 = vld [vmem:[%s3408_s26] sm:$0xff]  }
 0x3c0   : > { %v2687_v33 = vld [vmem:[%s1083_s11] ss:$0 sm:$0xff]  ;;  %s3790_s11 = smov (!%p2699_p1), %s3789_s29 }
 0x3c1   : > { %v1639_v35 = vmul.f32 1.442695, %v1636_v34 }
 0x3c3   : > { %3000 = vpow2.f32 %v1639_v35 }
 0x3cc   : > { %v2999_v36 = vpop.eup %2998 }
 0x3cd   : > { %v1641_v37 = vsel %vm1628_vm5, %v2999_v36, 0.0 }
 0x3ce   : > { %1642 = vadd.xlane.f32.xlu1 %v1641_v37 }
 0x3d0   : > { %v3001_v38 = vpop.eup %3000 }
 0x3d1   : > { %v1644_v39 = vsel %vm1628_vm5, %v3001_v38, 0.0 }
 0x3d2   : > { %1645 = vadd.xlane.f32.xlu1 %v1644_v39 }
 0x457   : > { %v1643_v40 = vpop.xlane.xlu1 %1642 }
 0x458   : > { %3002 = vrcp.f32 %v1643_v40 }
 0x45b   : > { %v1646_v41 = vpop.xlane.xlu1 %1645 }
 0x45c   : > { %3004 = vrcp.f32 %v1646_v41 }
 0x465   : > { %v3003_v42 = vpop.eup %3002 }
 0x466   : > { %v1649_v43 = vmul.f32 %v3003_v42, %v2999_v36 }
 0x468   : > { %v1651_v44 = vpack.c.bf16 %v1649_v43, %v1649_v43 }
 0x469   : > { %v3005_v45 = vpop.eup %3004 }
 0x46a   : > { %2831 = vmatmul.mubr.msk.bf16.vlgmr.msra.gmra.mxu0 %vm1628_vm5, %v1651_v44  ;;  %v1650_v46 = vmul.f32 %v3005_v45, %v3001_v38 }
 0x46b   : > { %2842 = vmatprep.mubr.msk.bf16.mxu0 %vm3115_vm1, %v3114_v17  ;;  %2841 = vmatpush3.bf16.msra.mxu0 %v2990_v48  ;;  %v2691_v48 = vld [vmem:[%s1091_s23] ss:$0 sm:$0xff] }
 0x46c   : > { %v1652_v47 = vpack.c.bf16 %v1650_v46, %v1650_v46  ;;  %2852 = vmatprep.subr.bf16.mxu0 %v3114_v17 }
 0x46e   : > { %2837 = vmatmul.mubr.msk.bf16.vlgmr.msra.gmra.mxu1 %vm1628_vm5, %v1652_v47 }
 0x46f   : > { %2848 = vmatprep.mubr.msk.bf16.mxu1 %vm3115_vm1, %v3114_v17  ;;  %2847 = vmatpush3.bf16.msra.mxu1 %v2991_v49 }
 0x470   : > { %2860 = vmatprep.subr.bf16.mxu1 %v3114_v17 }
 0x52a   : > { %v1696_v50 = vpop.f32.mrf.mxu0 }
 0x52b   : > { %v1748_v51 = vpack.c.bf16 %v1696_v50, %v1696_v50 }
 0x52c   : > { %v2832_v52 = vpop.f32.mrf.mxu0 }
 0x52d   : > { %2843 = vmatmul.mubr.msk.bf16.vlgmr.msra.gmra.mxu0 %vm1524_vm3, %v1748_v51 }
 0x52e   : > { %v1699_v53 = vpop.f32.mrf.mxu0  ;;  %v1742_v54 = vpop.f32.mrf.mxu1  ;;  %2856 = vmatprep.mubr.msk.bf16.mxu0 %vm3115_vm1, %v3114_v17  ;;  %2853 = vmatpush3.bf16.msra.mxu0 %v2992_v16 }
 0x52f   : > { %v1749_v55 = vpack.c.bf16 %v1742_v54, %v1742_v54  ;;  %2854 = vmatprep.subr.bf16.mxu0 %v3114_v17 }
 0x530   : > { %v2833_v56 = vpop.f32.mrf.mxu0  ;;  %v2838_v57 = vpop.f32.mrf.mxu1 }
 0x531   : > { %2849 = vmatmul.mubr.msk.bf16.vlgmr.msra.gmra.mxu1 %vm1524_vm3, %v1749_v55 }
 0x532   : > { %v1745_v58 = vpop.f32.mrf.mxu1  ;;  %2868 = vmatprep.mubr.msk.bf16.mxu1 %vm3115_vm1, %v3114_v17  ;;  %2855 = vmatpush3.bf16.msra.mxu0 %v2993_v18 }
 0x533   : > { %2861 = vmatpush3.bf16.msra.mxu1 %v2994_v29 }
 0x534   : > { %v2839_v59 = vpop.f32.mrf.mxu1  ;;  %2862 = vmatprep.subr.bf16.mxu1 %v3114_v17 }
 0x537   : > { %2863 = vmatpush3.bf16.msra.mxu1 %v2995_v30 }
 0x538   : > { %2864 = vmatprep.subr.bf16.mxu1 %v3114_v17 }
 0x53b   : > { %2865 = vmatpush3.bf16.msra.mxu1 %v2996_v31 }
 0x53c   : > { %2866 = vmatprep.subr.bf16.mxu1 %v3114_v17 }
 0x53f   : > { %2867 = vmatpush3.bf16.msra.mxu1 %v2997_v32 }
 0x5ed   : > { %v1797_v60 = vpop.f32.mrf.mxu0 }
 0x5ee   : > { %v1852_v0 = vsel %vm1172_vm2, %v1797_v60, 0.0 }
 0x5ef   : > { %v2844_v61 = vpop.f32.mrf.mxu0 }
 0x5f1   : > { %v1800_v62 = vpop.f32.mrf.mxu0  ;;  %v1846_v63 = vpop.f32.mrf.mxu1 }
 0x5f2   : > { %v1853_v1 = vsel %vm1172_vm2, %v1846_v63, 0.0 }
 0x5f3   : > { %v1854_v3 = vadd.f32 %v1853_v1, %v1852_v0  ;;  %v2845_v4 = vpop.f32.mrf.mxu0  ;;  %v2850_v5 = vpop.f32.mrf.mxu1  ;;  %v2697_v1 = vld [vmem:[%s1094_s2] ss:$0 sm:$0xff]  ;;  %s3787_s2 = sld [smem:[#allocation40_spill]] (!%p2699_p1) }
 0x5f5   : > { %v1862_v6 = vadd.f32 %v2684_v2, %v1854_v3  ;;  %v1849_v7 = vpop.f32.mrf.mxu1  ;;  %v2698_v3 = vld [vmem:[%s1097_s10] ss:$0 sm:$0xff] }
 0x5f7   : > { %v2851_v8 = vpop.f32.mrf.mxu1  ;;  %v1863_v9 = vadd.f32 %v1862_v6, %v3448_v21 }
 0x5f9   : > { %v1866_v10 = vsel %vm1172_vm2, %v1863_v9, 0.0 }
 0x5fa   : > { %1867 = vadd.xlane.f32.xlu0 %v1866_v10 }
 0x683   : > { %v1868_v11 = vpop.xlane.xlu0 %1867 }
 0x684   : > { %v1870_v12 = vmul.f32 0.03125, %v1868_v11 }
 0x686   : > { %v1871_v13 = vsub.f32 %v1863_v9, %v1870_v12 }
 0x688   : > { %v1872_v14 = vmul.f32 %v1871_v13, %v1871_v13 }
 0x68a   : > { %v1873_v15 = vsel %vm1172_vm2, %v1872_v14, 0.0 }
 0x68b   : > { %1874 = vadd.xlane.f32.xlu1 %v1873_v15 }
 0x714   : > { %v1875_v21 = vpop.xlane.xlu1 %1874 }
 0x715   : > { %v1876_v19 = vmul.f32 0.03125, %v1875_v21 }
 0x717   : > { %v1877_v20 = vadd.f32 1e-12, %v1876_v19 }
 0x719   : > { %3006 = vrsqrt.f32 %v1877_v20 }
 0x726   : > { %v3007_v22 = vpop.eup %3006 }
 0x727   : > { %v1879_v24 = vmul.f32 %v3007_v22, %v1871_v13 }
 0x729   : > { %v1886_v26 = vmul.f32 %v2685_v23, %v1879_v24 }
 0x72b   : > { %v1893_v27 = vadd.f32 %v2686_v25, %v1886_v26 }
 0x72d   : > { %v1894_v28 = vpack.c.bf16 %v1893_v27, %v1893_v27 }
 0x72f   : > { %2857 = vmatmul.mubr.msk.bf16.vlgmr.msra.gmra.mxu0 %vm1172_vm2, %v1894_v28 }
 0x7ef   : > { %v1955_v34 = vpop.f32.mrf.mxu0 }
 0x7f0   : > { %v1956_v35 = vadd.f32 %v2687_v33, %v1955_v34 }
 0x7f1   : > { %v2858_v36 = vpop.f32.mrf.mxu0 }
 0x7f2   : > { %v1961_v37 = vmul.f32 %v1956_v35, %v1956_v35 }
 0x7f3   : > { %v1958_v38 = vpop.f32.mrf.mxu0 }
 0x7f4   : > { %v1962_v39 = vmul.f32 %v1961_v37, %v1956_v35 }
 0x7f5   : > { %v2859_v40 = vpop.f32.mrf.mxu0 }
 0x7f6   : > { %v1963_v41 = vmul.f32 0.044715, %v1962_v39 }
 0x7f8   : > { %v1964_v42 = vadd.f32 %v1963_v41, %v1956_v35 }
 0x7fa   : > { %v1965_v43 = vmul.f32 0.7978846, %v1964_v42 }
 0x7fc   : > { %3008 = vtanh.f32 %v1965_v43 }
 0x809   : > { %v3009_v17 = vpop.eup %3008 }
 0x80a   : > { %v1967_v44 = vadd.f32 1.0, %v3009_v17 }
 0x80c   : > { %v1968_v45 = vmul.f32 0.5, %v1967_v44 }
 0x80e   : > { %v1969_v46 = vmul.f32 %v1968_v45, %v1956_v35 }
 0x810   : > { %v1970_v47 = vpack.c.bf16 %v1969_v46, %v1969_v46 }
 0x812   : > { %2869 = vmatmul.mubr.msk.bf16.vlgmr.msra.gmra.mxu1 %vm2010_vm6, %v1970_v47 }
 0x8d2   : > { %v2048_v49 = vpop.f32.mrf.mxu1 }
 0x8d3   : > { %v2049_v50 = vadd.f32 %v2691_v48, %v2048_v49 }
 0x8d4   : > { %v2870_v51 = vpop.f32.mrf.mxu1 }
 0x8d5   : > { %v2054_v52 = vadd.f32 %v2049_v50, %v1893_v27 }
 0x8d6   : > { %v2051_v53 = vpop.f32.mrf.mxu1 }
 0x8d7   : > { %v2057_v54 = vsel %vm1172_vm2, %v2054_v52, 0.0 }
 0x8d8   : > { %2058 = vadd.xlane.f32.xlu0 %v2057_v54  ;;  %v2871_v55 = vpop.f32.mrf.mxu1 }
 0x961   : > { %v2059_v56 = vpop.xlane.xlu0 %2058 }
 0x962   : > { %v2060_v57 = vmul.f32 0.03125, %v2059_v56 }
 0x964   : > { %v2061_v58 = vsub.f32 %v2054_v52, %v2060_v57 }
 0x966   : > { %v2062_v59 = vmul.f32 %v2061_v58, %v2061_v58 }
 0x968   : > { %v2063_v60 = vsel %vm1172_vm2, %v2062_v59, 0.0 }
 0x969   : > { %2064 = vadd.xlane.f32.xlu1 %v2063_v60 }
 0x9f2   : > { %v2065_v61 = vpop.xlane.xlu1 %2064 }
 0x9f3   : > { %v2066_v62 = vmul.f32 0.03125, %v2065_v61 }
 0x9f5   : > { %v2067_v63 = vadd.f32 1e-12, %v2066_v62 }
 0x9f7   : > { %3010 = vrsqrt.f32 %v2067_v63 }
 0xa04   : > { %v3011_v0 = vpop.eup %3010 }
 0xa05   : > { %v2069_v2 = vmul.f32 %v3011_v0, %v2061_v58 }
 0xa07   : > { %v2076_v4 = vmul.f32 %v2697_v1, %v2069_v2  ;;  %2088 = sbr.rel (%p2699_p1) target bundleno = 3325 (0xcfd), region = 132 }
 0xa09   : > { %v2083_v5 = vadd.f32 %v2698_v3, %v2076_v4 }
 0xa0b   : > { %2084 = vst.msk [vmem:[#allocation2] sm:$0xff] %vm1172_vm2, %v2083_v5 }
 0xa0c   : > { %v2089_v6 = vld [vmem:[%s3786_s24] sm:$0x3]  ;;  %vm2090_vm7 = vcmask 58368   ;;  %v3116_v8 = vmov 0.0   ;;  %vm3117_vm8 = vmmov 0   ;;  %v3013_v9 = vld [vmem:[%s3787_s2 + $0x8] sm:$0xff]  }
 0xa0d   : > { %v2091_v7 = vsel %vm2090_vm7, %v2089_v6, 0.0  ;;  %2872 = vmatprep.subr.mxu0 %v3116_v8  ;;  %2874 = vmatprep.mubr.msk.f32.mxu0 %vm3117_vm8, %v3116_v8  ;;  %v3012_v12 = vld [vmem:[%s3788_s20 + $0x8] sm:$0xff]   ;;  %v3014_v14 = vld [vmem:[%s3788_s20] sm:$0xff]   ;;  %s3792_s24 = sld [smem:[#allocation43_spill]] }
 0xa0e   : > { %2092 = vadd.xlane.f32.xlu0 %v2091_v7  ;;  %2873 = vmatpush3.msra.mxu0 %v2083_v5  ;;  %v3015_v15 = vld [vmem:[%s3787_s2] sm:$0xff]   ;;  %v3016_v20 = vld [vmem:[%s3789_s29 + $0x8] sm:$0xff]  }
 0xa0f   : > { %2877 = vmatprep.subr.bf16.mxu1 %v3116_v8  ;;  %2885 = vmatprep.subr.bf16.mxu0 %v3116_v8  ;;  %v3017_v22 = vld [vmem:[%s3790_s11] sm:$0xff]  }
 0xa10   : > { %2881 = vmatprep.mubr.msk.bf16.mxu1 %vm3117_vm8, %v3116_v8  ;;  %2878 = vmatpush3.bf16.msra.mxu1 %v3013_v9  ;;  %v2290_v25 = vld [vmem:[%s3791_s25] sm:$0x1] }
 0xa11   : > { %2879 = vmatprep.subr.bf16.mxu1 %v3116_v8 }
 0xa13   : > { %v2298_v36 = vld [vmem:[%s3792_s24] sm:$0x1] }
 0xa14   : > { %2880 = vmatpush3.bf16.msra.mxu1 %v3015_v15 }
 0xa15   : > { %2893 = vmatprep.subr.bf16.mxu1 %v3116_v8 }
 0xa97   : > { %v2093_v10 = vpop.xlane.xlu0 %2092 }
 0xa98   : > { %3018 = vrcp.f32 %v2093_v10 }
 0xaa5   : > { %v3019_v11 = vpop.eup %3018 }
 0xaa6   : > { %v2095_v13 = vmul.f32 %v3019_v11, %v2089_v6 }
 0xaa8   : > { %2875 = vmatmul.mubr.msk.f32.vlgmr.msra.gmra.mxu0 %vm1628_vm5, %v2095_v13 }
 0xaa9   : > { %2886 = vmatpush3.bf16.msra.mxu0 %v3012_v12  ;;  %2889 = vmatprep.mubr.msk.bf16.mxu0 %vm3117_vm8, %v3116_v8 }
 0xaaa   : > { %2887 = vmatprep.subr.bf16.mxu0 %v3116_v8 }
 0xaad   : > { %2888 = vmatpush3.bf16.msra.mxu0 %v3014_v14 }
 0xb68   : > { %v2165_v16 = vpop.f32.mrf.mxu0 }
 0xb69   : > { %v2169_v18 = vpack.c.bf16 %v2165_v16, %v2165_v16 }
 0xb6a   : > { %v2876_v21 = vpop.f32.mrf.mxu0 }
 0xb6b   : > { %v2179_v19 = vshrl.u32 %v2169_v18, 16  ;;  %2890 = vmatmul.mubr.msk.bf16.vlgmr.msra.gmra.mxu0 %vm1172_vm2, %v2169_v18 }
 0xb6d   : > { %2882 = vmatmul.mubr.msk.bf16.vlgmr.msra.gmra.mxu1 %vm1172_vm2, %v2179_v19 }
 0xb6e   : > { %2897 = vmatprep.mubr.msk.bf16.mxu1 %vm3117_vm8, %v3116_v8  ;;  %2894 = vmatpush3.bf16.msra.mxu1 %v3016_v20 }
 0xb6f   : > { %2895 = vmatprep.subr.bf16.mxu1 %v3116_v8 }
 0xb72   : > { %2896 = vmatpush3.bf16.msra.mxu1 %v3017_v22 }
 0xc2b   : > { %v2284_v23 = vpop.f32.mrf.mxu0 }
 0xc2d   : > { %v2230_v24 = vpop.f32.mrf.mxu1  ;;  %v2891_v26 = vpop.f32.mrf.mxu0 }
 0xc2e   : > { %v2285_v27 = vadd.f32 %v2284_v23, %v2230_v24 }
 0xc2f   : > { %v2883_v28 = vpop.f32.mrf.mxu1  ;;  %v2287_v29 = vpop.f32.mrf.mxu0 }
 0xc30   : > { %v2291_v30 = vadd.f32 %v2290_v25, %v2285_v27 }
 0xc31   : > { %v2233_v31 = vpop.f32.mrf.mxu1  ;;  %v2892_v32 = vpop.f32.mrf.mxu0 }
 0xc32   : > { %v2292_v33 = vmax.f32 %v2291_v30, 0.0 }
 0xc33   : > { %v2884_v34 = vpop.f32.mrf.mxu1 }
 0xc34   : > { %v2293_v35 = vpack.c.bf16 %v2292_v33, %v2292_v33 }
 0xc36   : > { %2898 = vmatmul.mubr.msk.bf16.vlgmr.msra.gmra.mxu1 %vm1172_vm2, %v2293_v35 }
 0xcf6   : > { %v2348_v37 = vpop.f32.mrf.mxu1 }
 0xcf7   : > { %v2349_v38 = vadd.f32 %v2348_v37, %v2298_v36 }
 0xcf8   : > { %v2899_v39 = vpop.f32.mrf.mxu1 }
 0xcf9   : > { %2354 = vst [vmem:[%s3424_s30] sm:$0x1] %v2349_v38 }
 0xcfa   : > { %v2351_v40 = vpop.f32.mrf.mxu1 }
 0xcfc   : > { %v2900_v41 = vpop.f32.mrf.mxu1 }
 0xcfd PF: > { %s3793_s6 = sld [smem:[#allocation9_spill]]  ;;  %s2368_s28 = sshll.u32 %s3424_s30, 4  ;;  %s2369_s28 = int_to_ptr.vmem [resolvable:$true] %s2368_s28 }
 0xcfe   : > { %s3795_s21 = sld [smem:[#allocation44_spill]]  ;;  %s3796_s9 = sand.u32 1, %s3088_s3  }
 0xcff   : > { %s2356_s7 = scalar_lea.sflag [#allocation4], %s3796_s9  ;;  %s3020_s29 = scalar_lea.vmem %s2369_s28, 16 }
 0xd00   : > { %p3021_p2 = scmp.ne.s32.totalorder %s2369_s28, %s3020_s29  ;;  %s3118_s26 = smov [#allocation3]  }
 0xd01   : > { %s3024_s23 = sshll.u32 %s3118_s26, 4  ;;  %s3025_s23 = int_to_ptr.vmem [resolvable:$false] %s3024_s23 }
 0xd02   : > { %p3022_p4 = pnand %p3021_p2, %p3303_p3  ;;  %s3026_s5 = scalar_lea.vmem %s3025_s23, 32 }
 0xd03   : > { %s2710_s8 = sshll.u32 %s3793_s6, 4  ;;  %p3027_p6 = scmp.lt.s32.totalorder %s2369_s28, %s3025_s23 }
 0xd04   : > { %s2366_s4 = scalar_lea.hbm %s3795_s21, %s2710_s8  ;;  %p3023_p5 = pneg %p3022_p4 }
 0xd05   : > { %p3028_p7 = scmp.lt.s32.totalorder %s3026_s5, %s3020_s29 }
 0xd07   : > { %p3029_p8 = por %p3028_p7, %p3027_p6 }
 0xd09   : > { %p3030_p10 = pnand %p3029_p8, %p3023_p5 }
 0xd0b   : > { %3033 = shalt.err (!%p3030_p10)
}
 0xd0c   : > { %s3034_s27 = scalar_lea.hbm %s2366_s4, 16  ;;  %s3038_s1 = scalar_lea.hbm %s3795_s21, 32 }
 0xd0d   : > { %p3035_p11 = scmp.ne.s32.totalorder %s2366_s4, %s3034_s27  ;;  %p3039_p0 = scmp.lt.s32.totalorder %s2366_s4, %s3795_s21 }
 0xd0e   : > { %p3040_p1 = scmp.lt.s32.totalorder %s3038_s1, %s3034_s27 }
 0xd0f   : > { %p3036_p12 = pnand %p3035_p11, %p3303_p3 }
 0xd10   : > { %p3041_p2 = por %p3040_p1, %p3039_p0 }
 0xd11   : > { %p3037_p13 = pneg %p3036_p12 }
 0xd13   : > { %p3042_p4 = pnand %p3041_p2, %p3037_p13 }
 0xd15   : > { %3045 = shalt.err (!%p3042_p4)
}
 0xd16   : > { %2901 = dma.vmem_to_hbm [thread:$0]  (%p3303_p3), %s2369_s28, 16, %s2366_s4, %s2356_s7  }
 0xd17 PF: > { %s3797_s6 = sld [smem:[#allocation12_spill]] }
 0xd18   : > { %s3798_s8 = sld [smem:[#allocation6_spill]] }
 0xd1d   : > { %p2907_p5 = scmp.ge.s32.totalorder %s3797_s6, 2 }
 0xd1e   : > { %s2380_s22 = sand.u32 1, %s3798_s8  }
 0xd1f   : > { %p2904_p6 = pnand %p2907_p5, %p3313_p9  ;;  %s2381_s9 = scalar_lea.sflag [#allocation4], %s2380_s22 }
 0xd21   : > { %p2905_p7 = pneg %p2904_p6 }
 0xd23   : > { %3079 = dma.done.wait (%p2905_p7), %s2381_s9, 16  }
 0xd24   : > { %3081 = vsyncadd (%p2905_p7), %s2381_s9, 4294967280  ;;  %s39_s0 = sadd.s32 1, %s3797_s6   ;;  %s3800_s29 = sld [smem:[#allocation7_spill]] }
 0xd25   : > { %p36_p8 = scmp.ge.s32.totalorder %s39_s0, 6   ;;  %s3801_s7 = sld [smem:[#allocation17_spill]] }
 0xd26   : > { %s3802_s28 = sld [smem:[#allocation10_spill]]  ;;  %s3806_s27 = smov %s3088_s3 }
 0xd27   : > { %s3803_s8 = sld [smem:[#allocation11_spill]] }
 0xd28   : > { %s3804_s4 = sld [smem:[#allocation13_spill]] }
 0xd29   : > { %s3805_s10 = sld [smem:[#allocation15_spill]] }
 0xd2a   : > { %s3807_s3 = smov %s3800_s29 }
 0xd2b   :  { %38 = sbr.rel (!%p36_p8) target bundleno = 26 (0x1a), region = 221 }
 0xd2f   : > { %s3808_s29 = smov %s3805_s10 }
 0xd30   :  { %2385 = vsyncpa [#allocation4], 1 }
 0xd31   :  { %2387 = vsyncpa [#allocation4 + $0x1], 1 }

</bundles_post_ra>
